<compile_context>
chip_gen: v7x
topology: tpu7x:2x2x1
jax: 0.10.0
libtpu: 0.0.40
codegen_flags: <defaults>
</compile_context>

<pallas_src>
import functools

import jax
import jax.numpy as jnp
from jax import lax
from jax.experimental import pallas as pl
from jax.experimental.pallas import tpu as pltpu

_LANES = 128


def _round_up(x, m):
    return -(-x // m) * m


def _mcw_kernel(vr_ref, vi_ref, wr_ref, wi_ref, or_ref, oi_ref, *, chunk):
    # vr_ref / vi_ref : (bb, C, tr, 128)   batch block, in-channel, rows, lanes
    # wr_ref / wi_ref : (C,  C, tr, 128)   [i (in-chan), h (out-chan), rows, lanes]
    # or_ref / oi_ref : (bb, C, tr, 128)
    bb, c, tr, _ = vr_ref.shape
    nchunks = tr // chunk

    def chunk_body(ci, carry):
        r0 = pl.multiple_of(ci * chunk, chunk)       # aligned sublane offset
        rows = pl.ds(r0, chunk)
        for b in range(bb):
            # Hoist ONLY this chunk's V planes: 2*C*(chunk/8) vregs
            # (C=4, chunk=16 -> 16 vregs), reused across every output channel.
            vr = [vr_ref[b, i, rows, :] for i in range(c)]
            vi = [vi_ref[b, i, rows, :] for i in range(c)]
            for h in range(c):
                # W tiles are re-read from VMEM per (h, i): vld slots have
                # slack (kernel is VALU-bound in steady state), spills don't.
                wr0 = wr_ref[0, h, rows, :]
                wi0 = wi_ref[0, h, rows, :]
                # V * conj(W):  (Vr + iVi)(Wr - iWi)
                acc_r = vr[0] * wr0 + vi[0] * wi0
                acc_i = vi[0] * wr0 - vr[0] * wi0
                for i in range(1, c):
                    wri = wr_ref[i, h, rows, :]
                    wii = wi_ref[i, h, rows, :]
                    acc_r = acc_r + vr[i] * wri + vi[i] * wii
                    acc_i = acc_i + vi[i] * wri - vr[i] * wii
                or_ref[b, h, rows, :] = acc_r
                oi_ref[b, h, rows, :] = acc_i
        return carry

    lax.fori_loop(0, nchunks, chunk_body, 0)


def _vmem_limit_bytes():
    # Per-generation scoped-VMEM limit: v5e/v6e have 128 MiB physical, v7x 64 MiB.
    try:
        phys = int(pltpu.get_tpu_info().vmem_capacity_bytes)
    except Exception:
        phys = 64 * 1024 * 1024          # conservative (v7x-sized) fallback
    return min(phys // 2, 64 * 1024 * 1024)


def _per_row_bytes(bb, c):
    # f32 bytes per row of 128 lanes for one (single-buffered) block set:
    # V(re+im) + out(re+im): 4*bb*c planes; W(re+im): 2*c*c planes.
    return 4 * _LANES * (4 * bb * c + 2 * c * c)


def _plan_tiles(batch, c, rows, target_rows, block_budget):
    """Pick (bb, tr, chunk, grid_rows, rows_pad): tr is always a multiple of
    `chunk` (itself a multiple of 8), and rows are padded to grid_rows*tr."""
    chunk = 16 if c <= 8 else 8
    # Fold as much of the (small) batch into the block as the budget allows.
    bb = 1
    for d in range(min(batch, 8), 0, -1):
        if batch % d == 0 and 2 * chunk * _per_row_bytes(d, c) <= block_budget:
            bb = d
            break
    per_row = _per_row_bytes(bb, c)
    tr_max = max(chunk, (block_budget // (2 * per_row)) // chunk * chunk)

    if rows <= chunk:
        tr = _round_up(max(rows, 1), 8)
        chunk = tr                       # single full-tile chunk
        g = 1
    else:
        tr_target = max(chunk, min(target_rows, tr_max))
        g = -(-rows // tr_target)
        tr = _round_up(-(-rows // g), chunk)
    rows_pad = g * tr
    return bb, tr, chunk, g, rows_pad


def multichannel_weight_forward_planar(vr, vi, wr, wi, *, target_rows=512):
    """Planar fast path (no complex conversion): f32 real/imag planes.

    vr, vi: (B, C, H, W) float32;  wr, wi: (C, C, H, W) float32
    returns (out_r, out_i): (B, C, H, W) float32.
    """
    B, C, H, Wd = vr.shape
    assert wr.shape == (C, C, H, Wd)
    S = H * Wd
    rows = -(-S // _LANES)

    vmem_limit = _vmem_limit_bytes()
    block_budget = (vmem_limit * 3) // 4
    bb, tr, chunk, g, rows_pad = _plan_tiles(B, C, rows, target_rows, block_budget)
    S_pad = rows_pad * _LANES

    def prep(x, lead):
        x = x.astype(jnp.float32).reshape(lead + (S,))
        if S_pad != S:
            x = jnp.pad(x, [(0, 0)] * len(lead) + [(0, S_pad - S)])
        return x.reshape(lead + (rows_pad, _LANES))

    vr4 = prep(vr, (B, C))
    vi4 = prep(vi, (B, C))
    wr4 = prep(wr, (C, C))
    wi4 = prep(wi, (C, C))

    # Spatial tiles outer ("parallel"); residual batch innermost ("arbitrary")
    # with the weight index_map independent of batch -> W DMA'd once per tile.
    grid = (rows_pad // tr, B // bb)

    v_spec = pl.BlockSpec((bb, C, tr, _LANES), lambda r, b: (b, 0, r, 0))
    w_spec = pl.BlockSpec((C, C, tr, _LANES), lambda r, b: (0, 0, r, 0))
    o_spec = pl.BlockSpec((bb, C, tr, _LANES), lambda r, b: (b, 0, r, 0))

    flops = 8 * B * C * C * S_pad
    bytes_accessed = 4 * (2 * B * C * S_pad      # V in
                          + 2 * C * C * S_pad    # W in (read once; batch innermost)
                          + 2 * B * C * S_pad)   # out

    out_r, out_i = pl.pallas_call(
        functools.partial(_mcw_kernel, chunk=chunk),
        out_shape=(
            jax.ShapeDtypeStruct((B, C, rows_pad, _LANES), jnp.float32),
            jax.ShapeDtypeStruct((B, C, rows_pad, _LANES), jnp.float32),
        ),
        grid_spec=pltpu.PrefetchScalarGridSpec(
            num_scalar_prefetch=0,
            grid=grid,
            in_specs=[v_spec, v_spec, w_spec, w_spec],
            out_specs=[o_spec, o_spec],
        ),
        compiler_params=pltpu.CompilerParams(
            dimension_semantics=("parallel", "arbitrary"),
            vmem_limit_bytes=vmem_limit,
        ),
        cost_estimate=pl.CostEstimate(
            flops=flops, transcendentals=0, bytes_accessed=bytes_accessed),
    )(vr4, vi4, wr4, wi4)

    def unprep(x):
        x = x.reshape(B, C, S_pad)
        if S_pad != S:
            x = x[:, :, :S]
        return x.reshape(B, C, H, Wd)

    return unprep(out_r), unprep(out_i)


@functools.partial(jax.jit, static_argnames=("target_rows",))
def multichannel_weight_forward(V, W, *, target_rows=512):
    """V: complex (B, C, H, W);  W: complex (C, C, H, W) -> complex64 (B, C, H, W)."""
    V = V.astype(jnp.complex64)
    W = W.astype(jnp.complex64)
    # TODO(synk): if the surrounding model keeps planar real/imag activations
    # (and pre-splits the weight parameter once), call
    # multichannel_weight_forward_planar directly and skip this split/recombine
    # (each is a full extra HBM round trip around an HBM-bound kernel).
    vr, vi = jnp.real(V), jnp.imag(V)
    wr, wi = jnp.real(W), jnp.imag(W)
    out_r, out_i = multichannel_weight_forward_planar(
        vr, vi, wr, wi, target_rows=target_rows)
    return lax.complex(out_r, out_i)


if __name__ == "__main__":
    # Small shapes consistent with the module: batch=2, channels=4, spatial 16x16.
    B, C, H, Wd = 2, 4, 16, 16

    key = jax.random.PRNGKey(0)
    k_vr, k_vi, k_wr, k_wi = jax.random.split(key, 4)

    # Deterministic complex64 "parameter" (C, C, H, W) and complex input V.
    w_r = jax.random.normal(k_wr, (C, C, H, Wd), dtype=jnp.float32)
    w_i = jax.random.normal(k_wi, (C, C, H, Wd), dtype=jnp.float32)
    weight = (w_r + 1j * w_i).astype(jnp.complex64)

    v_r = jax.random.normal(k_vr, (B, C, H, Wd), dtype=jnp.float32)
    v_i = jax.random.normal(k_vi, (B, C, H, Wd), dtype=jnp.float32)
    V = (v_r + 1j * v_i).astype(jnp.complex64)

    out = multichannel_weight_forward(V, weight)
    out = jax.block_until_ready(out)

    # Reference: same semantics as torch contract('bi...,ih...->bh...', V, W.conj()).
    ref = jnp.einsum("biyx,ihyx->bhyx", V, jnp.conj(weight))
    assert out.shape == (B, C, H, Wd)
    assert out.dtype == jnp.complex64
    assert jnp.allclose(out, ref, atol=1e-4, rtol=1e-4)

    print("KERNEL_OK")
</pallas_src>

<mosaic_0001>
module attributes {stable_mosaic.version = 11 : i64} {
  func.func @_mcw_kernel(%arg0: i32, %arg1: i32, %arg2: memref<2x4x8x128xf32, #tpu.memory_space<vmem>>, %arg3: memref<2x4x8x128xf32, #tpu.memory_space<vmem>>, %arg4: memref<4x4x8x128xf32, #tpu.memory_space<vmem>>, %arg5: memref<4x4x8x128xf32, #tpu.memory_space<vmem>>, %arg6: memref<2x4x8x128xf32, #tpu.memory_space<vmem>>, %arg7: memref<2x4x8x128xf32, #tpu.memory_space<vmem>>) attributes {dimension_semantics = [#tpu.dimension_semantics<parallel>, #tpu.dimension_semantics<arbitrary>], iteration_bounds = array<i64: 1, 1>, scalar_prefetch = 0 : i64, scratch_operands = 0 : i64, tpu.core_type = #tpu.core_type<tc>, window_params = [{transform_indices = @transform_0, window_bounds = array<i64: 2, 4, 8, 128>}, {transform_indices = @transform_1, window_bounds = array<i64: 2, 4, 8, 128>}, {transform_indices = @transform_2, window_bounds = array<i64: 4, 4, 8, 128>}, {transform_indices = @transform_3, window_bounds = array<i64: 4, 4, 8, 128>}, {transform_indices = @transform_4, window_bounds = array<i64: 2, 4, 8, 128>}, {transform_indices = @transform_5, window_bounds = array<i64: 2, 4, 8, 128>}]} {
    %c0_i32 = arith.constant 0 : i32
    %c8_i32 = arith.constant 8 : i32
    %0 = arith.muli %c0_i32, %c8_i32 : i32
    %1 = tpu.assume_multiple %0, 8 : i32
    %c0 = arith.constant 0 : index
    %c0_0 = arith.constant 0 : index
    %2 = arith.index_cast %1 : i32 to index
    %c0_1 = arith.constant 0 : index
    %3 = vector.load %arg2[%c0, %c0_0, %2, %c0_1] : memref<2x4x8x128xf32, #tpu.memory_space<vmem>>, vector<1x1x8x128xf32>
    %4 = vector.shape_cast %3 : vector<1x1x8x128xf32> to vector<8x128xf32>
    %c0_2 = arith.constant 0 : index
    %c1 = arith.constant 1 : index
    %5 = arith.index_cast %1 : i32 to index
    %c0_3 = arith.constant 0 : index
    %6 = vector.load %arg2[%c0_2, %c1, %5, %c0_3] : memref<2x4x8x128xf32, #tpu.memory_space<vmem>>, vector<1x1x8x128xf32>
    %7 = vector.shape_cast %6 : vector<1x1x8x128xf32> to vector<8x128xf32>
    %c0_4 = arith.constant 0 : index
    %c2 = arith.constant 2 : index
    %8 = arith.index_cast %1 : i32 to index
    %c0_5 = arith.constant 0 : index
    %9 = vector.load %arg2[%c0_4, %c2, %8, %c0_5] : memref<2x4x8x128xf32, #tpu.memory_space<vmem>>, vector<1x1x8x128xf32>
    %10 = vector.shape_cast %9 : vector<1x1x8x128xf32> to vector<8x128xf32>
    %c0_6 = arith.constant 0 : index
    %c3 = arith.constant 3 : index
    %11 = arith.index_cast %1 : i32 to index
    %c0_7 = arith.constant 0 : index
    %12 = vector.load %arg2[%c0_6, %c3, %11, %c0_7] : memref<2x4x8x128xf32, #tpu.memory_space<vmem>>, vector<1x1x8x128xf32>
    %13 = vector.shape_cast %12 : vector<1x1x8x128xf32> to vector<8x128xf32>
    %c0_8 = arith.constant 0 : index
    %c0_9 = arith.constant 0 : index
    %14 = arith.index_cast %1 : i32 to index
    %c0_10 = arith.constant 0 : index
    %15 = vector.load %arg3[%c0_8, %c0_9, %14, %c0_10] : memref<2x4x8x128xf32, #tpu.memory_space<vmem>>, vector<1x1x8x128xf32>
    %16 = vector.shape_cast %15 : vector<1x1x8x128xf32> to vector<8x128xf32>
    %c0_11 = arith.constant 0 : index
    %c1_12 = arith.constant 1 : index
    %17 = arith.index_cast %1 : i32 to index
    %c0_13 = arith.constant 0 : index
    %18 = vector.load %arg3[%c0_11, %c1_12, %17, %c0_13] : memref<2x4x8x128xf32, #tpu.memory_space<vmem>>, vector<1x1x8x128xf32>
    %19 = vector.shape_cast %18 : vector<1x1x8x128xf32> to vector<8x128xf32>
    %c0_14 = arith.constant 0 : index
    %c2_15 = arith.constant 2 : index
    %20 = arith.index_cast %1 : i32 to index
    %c0_16 = arith.constant 0 : index
    %21 = vector.load %arg3[%c0_14, %c2_15, %20, %c0_16] : memref<2x4x8x128xf32, #tpu.memory_space<vmem>>, vector<1x1x8x128xf32>
    %22 = vector.shape_cast %21 : vector<1x1x8x128xf32> to vector<8x128xf32>
    %c0_17 = arith.constant 0 : index
    %c3_18 = arith.constant 3 : index
    %23 = arith.index_cast %1 : i32 to index
    %c0_19 = arith.constant 0 : index
    %24 = vector.load %arg3[%c0_17, %c3_18, %23, %c0_19] : memref<2x4x8x128xf32, #tpu.memory_space<vmem>>, vector<1x1x8x128xf32>
    %25 = vector.shape_cast %24 : vector<1x1x8x128xf32> to vector<8x128xf32>
    %c0_20 = arith.constant 0 : index
    %c0_21 = arith.constant 0 : index
    %26 = arith.index_cast %1 : i32 to index
    %c0_22 = arith.constant 0 : index
    %27 = vector.load %arg4[%c0_20, %c0_21, %26, %c0_22] : memref<4x4x8x128xf32, #tpu.memory_space<vmem>>, vector<1x1x8x128xf32>
    %28 = vector.shape_cast %27 : vector<1x1x8x128xf32> to vector<8x128xf32>
    %c0_23 = arith.constant 0 : index
    %c0_24 = arith.constant 0 : index
    %29 = arith.index_cast %1 : i32 to index
    %c0_25 = arith.constant 0 : index
    %30 = vector.load %arg5[%c0_23, %c0_24, %29, %c0_25] : memref<4x4x8x128xf32, #tpu.memory_space<vmem>>, vector<1x1x8x128xf32>
    %31 = vector.shape_cast %30 : vector<1x1x8x128xf32> to vector<8x128xf32>
    %32 = arith.mulf %4, %28 : vector<8x128xf32>
    %33 = arith.mulf %16, %31 : vector<8x128xf32>
    %34 = arith.addf %32, %33 : vector<8x128xf32>
    %35 = arith.mulf %16, %28 : vector<8x128xf32>
    %36 = arith.mulf %4, %31 : vector<8x128xf32>
    %37 = arith.subf %35, %36 : vector<8x128xf32>
    %c1_26 = arith.constant 1 : index
    %c0_27 = arith.constant 0 : index
    %38 = arith.index_cast %1 : i32 to index
    %c0_28 = arith.constant 0 : index
    %39 = vector.load %arg4[%c1_26, %c0_27, %38, %c0_28] : memref<4x4x8x128xf32, #tpu.memory_space<vmem>>, vector<1x1x8x128xf32>
    %40 = vector.shape_cast %39 : vector<1x1x8x128xf32> to vector<8x128xf32>
    %c1_29 = arith.constant 1 : index
    %c0_30 = arith.constant 0 : index
    %41 = arith.index_cast %1 : i32 to index
    %c0_31 = arith.constant 0 : index
    %42 = vector.load %arg5[%c1_29, %c0_30, %41, %c0_31] : memref<4x4x8x128xf32, #tpu.memory_space<vmem>>, vector<1x1x8x128xf32>
    %43 = vector.shape_cast %42 : vector<1x1x8x128xf32> to vector<8x128xf32>
    %44 = arith.mulf %7, %40 : vector<8x128xf32>
    %45 = arith.addf %34, %44 : vector<8x128xf32>
    %46 = arith.mulf %19, %43 : vector<8x128xf32>
    %47 = arith.addf %45, %46 : vector<8x128xf32>
    %48 = arith.mulf %19, %40 : vector<8x128xf32>
    %49 = arith.addf %37, %48 : vector<8x128xf32>
    %50 = arith.mulf %7, %43 : vector<8x128xf32>
    %51 = arith.subf %49, %50 : vector<8x128xf32>
    %c2_32 = arith.constant 2 : index
    %c0_33 = arith.constant 0 : index
    %52 = arith.index_cast %1 : i32 to index
    %c0_34 = arith.constant 0 : index
    %53 = vector.load %arg4[%c2_32, %c0_33, %52, %c0_34] : memref<4x4x8x128xf32, #tpu.memory_space<vmem>>, vector<1x1x8x128xf32>
    %54 = vector.shape_cast %53 : vector<1x1x8x128xf32> to vector<8x128xf32>
    %c2_35 = arith.constant 2 : index
    %c0_36 = arith.constant 0 : index
    %55 = arith.index_cast %1 : i32 to index
    %c0_37 = arith.constant 0 : index
    %56 = vector.load %arg5[%c2_35, %c0_36, %55, %c0_37] : memref<4x4x8x128xf32, #tpu.memory_space<vmem>>, vector<1x1x8x128xf32>
    %57 = vector.shape_cast %56 : vector<1x1x8x128xf32> to vector<8x128xf32>
    %58 = arith.mulf %10, %54 : vector<8x128xf32>
    %59 = arith.addf %47, %58 : vector<8x128xf32>
    %60 = arith.mulf %22, %57 : vector<8x128xf32>
    %61 = arith.addf %59, %60 : vector<8x128xf32>
    %62 = arith.mulf %22, %54 : vector<8x128xf32>
    %63 = arith.addf %51, %62 : vector<8x128xf32>
    %64 = arith.mulf %10, %57 : vector<8x128xf32>
    %65 = arith.subf %63, %64 : vector<8x128xf32>
    %c3_38 = arith.constant 3 : index
    %c0_39 = arith.constant 0 : index
    %66 = arith.index_cast %1 : i32 to index
    %c0_40 = arith.constant 0 : index
    %67 = vector.load %arg4[%c3_38, %c0_39, %66, %c0_40] : memref<4x4x8x128xf32, #tpu.memory_space<vmem>>, vector<1x1x8x128xf32>
    %68 = vector.shape_cast %67 : vector<1x1x8x128xf32> to vector<8x128xf32>
    %c3_41 = arith.constant 3 : index
    %c0_42 = arith.constant 0 : index
    %69 = arith.index_cast %1 : i32 to index
    %c0_43 = arith.constant 0 : index
    %70 = vector.load %arg5[%c3_41, %c0_42, %69, %c0_43] : memref<4x4x8x128xf32, #tpu.memory_space<vmem>>, vector<1x1x8x128xf32>
    %71 = vector.shape_cast %70 : vector<1x1x8x128xf32> to vector<8x128xf32>
    %72 = arith.mulf %13, %68 : vector<8x128xf32>
    %73 = arith.addf %61, %72 : vector<8x128xf32>
    %74 = arith.mulf %25, %71 : vector<8x128xf32>
    %75 = arith.addf %73, %74 : vector<8x128xf32>
    %76 = arith.mulf %25, %68 : vector<8x128xf32>
    %77 = arith.addf %65, %76 : vector<8x128xf32>
    %78 = arith.mulf %13, %71 : vector<8x128xf32>
    %79 = arith.subf %77, %78 : vector<8x128xf32>
    %c0_44 = arith.constant 0 : index
    %c0_45 = arith.constant 0 : index
    %80 = arith.index_cast %1 : i32 to index
    %c0_46 = arith.constant 0 : index
    %81 = vector.load %arg6[%c0_44, %c0_45, %80, %c0_46] : memref<2x4x8x128xf32, #tpu.memory_space<vmem>>, vector<1x1x8x128xf32>
    %82 = vector.shape_cast %81 : vector<1x1x8x128xf32> to vector<8x128xf32>
    %83 = vector.shape_cast %75 : vector<8x128xf32> to vector<1x1x8x128xf32>
    tpu.vector_store %arg6[%c0_44, %c0_45, %80, %c0_46], %83 {strides = array<i32>} : memref<2x4x8x128xf32, #tpu.memory_space<vmem>>, vector<1x1x8x128xf32>,
    %c0_47 = arith.constant 0 : index
    %c0_48 = arith.constant 0 : index
    %84 = arith.index_cast %1 : i32 to index
    %c0_49 = arith.constant 0 : index
    %85 = vector.load %arg7[%c0_47, %c0_48, %84, %c0_49] : memref<2x4x8x128xf32, #tpu.memory_space<vmem>>, vector<1x1x8x128xf32>
    %86 = vector.shape_cast %85 : vector<1x1x8x128xf32> to vector<8x128xf32>
    %87 = vector.shape_cast %79 : vector<8x128xf32> to vector<1x1x8x128xf32>
    tpu.vector_store %arg7[%c0_47, %c0_48, %84, %c0_49], %87 {strides = array<i32>} : memref<2x4x8x128xf32, #tpu.memory_space<vmem>>, vector<1x1x8x128xf32>,
    %c0_50 = arith.constant 0 : index
    %c1_51 = arith.constant 1 : index
    %88 = arith.index_cast %1 : i32 to index
    %c0_52 = arith.constant 0 : index
    %89 = vector.load %arg4[%c0_50, %c1_51, %88, %c0_52] : memref<4x4x8x128xf32, #tpu.memory_space<vmem>>, vector<1x1x8x128xf32>
    %90 = vector.shape_cast %89 : vector<1x1x8x128xf32> to vector<8x128xf32>
    %c0_53 = arith.constant 0 : index
    %c1_54 = arith.constant 1 : index
    %91 = arith.index_cast %1 : i32 to index
    %c0_55 = arith.constant 0 : index
    %92 = vector.load %arg5[%c0_53, %c1_54, %91, %c0_55] : memref<4x4x8x128xf32, #tpu.memory_space<vmem>>, vector<1x1x8x128xf32>
    %93 = vector.shape_cast %92 : vector<1x1x8x128xf32> to vector<8x128xf32>
    %94 = arith.mulf %4, %90 : vector<8x128xf32>
    %95 = arith.mulf %16, %93 : vector<8x128xf32>
    %96 = arith.addf %94, %95 : vector<8x128xf32>
    %97 = arith.mulf %16, %90 : vector<8x128xf32>
    %98 = arith.mulf %4, %93 : vector<8x128xf32>
    %99 = arith.subf %97, %98 : vector<8x128xf32>
    %c1_56 = arith.constant 1 : index
    %c1_57 = arith.constant 1 : index
    %100 = arith.index_cast %1 : i32 to index
    %c0_58 = arith.constant 0 : index
    %101 = vector.load %arg4[%c1_56, %c1_57, %100, %c0_58] : memref<4x4x8x128xf32, #tpu.memory_space<vmem>>, vector<1x1x8x128xf32>
    %102 = vector.shape_cast %101 : vector<1x1x8x128xf32> to vector<8x128xf32>
    %c1_59 = arith.constant 1 : index
    %c1_60 = arith.constant 1 : index
    %103 = arith.index_cast %1 : i32 to index
    %c0_61 = arith.constant 0 : index
    %104 = vector.load %arg5[%c1_59, %c1_60, %103, %c0_61] : memref<4x4x8x128xf32, #tpu.memory_space<vmem>>, vector<1x1x8x128xf32>
    %105 = vector.shape_cast %104 : vector<1x1x8x128xf32> to vector<8x128xf32>
    %106 = arith.mulf %7, %102 : vector<8x128xf32>
    %107 = arith.addf %96, %106 : vector<8x128xf32>
    %108 = arith.mulf %19, %105 : vector<8x128xf32>
    %109 = arith.addf %107, %108 : vector<8x128xf32>
    %110 = arith.mulf %19, %102 : vector<8x128xf32>
    %111 = arith.addf %99, %110 : vector<8x128xf32>
    %112 = arith.mulf %7, %105 : vector<8x128xf32>
    %113 = arith.subf %111, %112 : vector<8x128xf32>
    %c2_62 = arith.constant 2 : index
    %c1_63 = arith.constant 1 : index
    %114 = arith.index_cast %1 : i32 to index
    %c0_64 = arith.constant 0 : index
    %115 = vector.load %arg4[%c2_62, %c1_63, %114, %c0_64] : memref<4x4x8x128xf32, #tpu.memory_space<vmem>>, vector<1x1x8x128xf32>
    %116 = vector.shape_cast %115 : vector<1x1x8x128xf32> to vector<8x128xf32>
    %c2_65 = arith.constant 2 : index
    %c1_66 = arith.constant 1 : index
    %117 = arith.index_cast %1 : i32 to index
    %c0_67 = arith.constant 0 : index
    %118 = vector.load %arg5[%c2_65, %c1_66, %117, %c0_67] : memref<4x4x8x128xf32, #tpu.memory_space<vmem>>, vector<1x1x8x128xf32>
    %119 = vector.shape_cast %118 : vector<1x1x8x128xf32> to vector<8x128xf32>
    %120 = arith.mulf %10, %116 : vector<8x128xf32>
    %121 = arith.addf %109, %120 : vector<8x128xf32>
    %122 = arith.mulf %22, %119 : vector<8x128xf32>
    %123 = arith.addf %121, %122 : vector<8x128xf32>
    %124 = arith.mulf %22, %116 : vector<8x128xf32>
    %125 = arith.addf %113, %124 : vector<8x128xf32>
    %126 = arith.mulf %10, %119 : vector<8x128xf32>
    %127 = arith.subf %125, %126 : vector<8x128xf32>
    %c3_68 = arith.constant 3 : index
    %c1_69 = arith.constant 1 : index
    %128 = arith.index_cast %1 : i32 to index
    %c0_70 = arith.constant 0 : index
    %129 = vector.load %arg4[%c3_68, %c1_69, %128, %c0_70] : memref<4x4x8x128xf32, #tpu.memory_space<vmem>>, vector<1x1x8x128xf32>
    %130 = vector.shape_cast %129 : vector<1x1x8x128xf32> to vector<8x128xf32>
    %c3_71 = arith.constant 3 : index
    %c1_72 = arith.constant 1 : index
    %131 = arith.index_cast %1 : i32 to index
    %c0_73 = arith.constant 0 : index
    %132 = vector.load %arg5[%c3_71, %c1_72, %131, %c0_73] : memref<4x4x8x128xf32, #tpu.memory_space<vmem>>, vector<1x1x8x128xf32>
    %133 = vector.shape_cast %132 : vector<1x1x8x128xf32> to vector<8x128xf32>
    %134 = arith.mulf %13, %130 : vector<8x128xf32>
    %135 = arith.addf %123, %134 : vector<8x128xf32>
    %136 = arith.mulf %25, %133 : vector<8x128xf32>
    %137 = arith.addf %135, %136 : vector<8x128xf32>
    %138 = arith.mulf %25, %130 : vector<8x128xf32>
    %139 = arith.addf %127, %138 : vector<8x128xf32>
    %140 = arith.mulf %13, %133 : vector<8x128xf32>
    %141 = arith.subf %139, %140 : vector<8x128xf32>
    %c0_74 = arith.constant 0 : index
    %c1_75 = arith.constant 1 : index
    %142 = arith.index_cast %1 : i32 to index
    %c0_76 = arith.constant 0 : index
    %143 = vector.load %arg6[%c0_74, %c1_75, %142, %c0_76] : memref<2x4x8x128xf32, #tpu.memory_space<vmem>>, vector<1x1x8x128xf32>
    %144 = vector.shape_cast %143 : vector<1x1x8x128xf32> to vector<8x128xf32>
    %145 = vector.shape_cast %137 : vector<8x128xf32> to vector<1x1x8x128xf32>
    tpu.vector_store %arg6[%c0_74, %c1_75, %142, %c0_76], %145 {strides = array<i32>} : memref<2x4x8x128xf32, #tpu.memory_space<vmem>>, vector<1x1x8x128xf32>,
    %c0_77 = arith.constant 0 : index
    %c1_78 = arith.constant 1 : index
    %146 = arith.index_cast %1 : i32 to index
    %c0_79 = arith.constant 0 : index
    %147 = vector.load %arg7[%c0_77, %c1_78, %146, %c0_79] : memref<2x4x8x128xf32, #tpu.memory_space<vmem>>, vector<1x1x8x128xf32>
    %148 = vector.shape_cast %147 : vector<1x1x8x128xf32> to vector<8x128xf32>
    %149 = vector.shape_cast %141 : vector<8x128xf32> to vector<1x1x8x128xf32>
    tpu.vector_store %arg7[%c0_77, %c1_78, %146, %c0_79], %149 {strides = array<i32>} : memref<2x4x8x128xf32, #tpu.memory_space<vmem>>, vector<1x1x8x128xf32>,
    %c0_80 = arith.constant 0 : index
    %c2_81 = arith.constant 2 : index
    %150 = arith.index_cast %1 : i32 to index
    %c0_82 = arith.constant 0 : index
    %151 = vector.load %arg4[%c0_80, %c2_81, %150, %c0_82] : memref<4x4x8x128xf32, #tpu.memory_space<vmem>>, vector<1x1x8x128xf32>
    %152 = vector.shape_cast %151 : vector<1x1x8x128xf32> to vector<8x128xf32>
    %c0_83 = arith.constant 0 : index
    %c2_84 = arith.constant 2 : index
    %153 = arith.index_cast %1 : i32 to index
    %c0_85 = arith.constant 0 : index
    %154 = vector.load %arg5[%c0_83, %c2_84, %153, %c0_85] : memref<4x4x8x128xf32, #tpu.memory_space<vmem>>, vector<1x1x8x128xf32>
    %155 = vector.shape_cast %154 : vector<1x1x8x128xf32> to vector<8x128xf32>
    %156 = arith.mulf %4, %152 : vector<8x128xf32>
    %157 = arith.mulf %16, %155 : vector<8x128xf32>
    %158 = arith.addf %156, %157 : vector<8x128xf32>
    %159 = arith.mulf %16, %152 : vector<8x128xf32>
    %160 = arith.mulf %4, %155 : vector<8x128xf32>
    %161 = arith.subf %159, %160 : vector<8x128xf32>
    %c1_86 = arith.constant 1 : index
    %c2_87 = arith.constant 2 : index
    %162 = arith.index_cast %1 : i32 to index
    %c0_88 = arith.constant 0 : index
    %163 = vector.load %arg4[%c1_86, %c2_87, %162, %c0_88] : memref<4x4x8x128xf32, #tpu.memory_space<vmem>>, vector<1x1x8x128xf32>
    %164 = vector.shape_cast %163 : vector<1x1x8x128xf32> to vector<8x128xf32>
    %c1_89 = arith.constant 1 : index
    %c2_90 = arith.constant 2 : index
    %165 = arith.index_cast %1 : i32 to index
    %c0_91 = arith.constant 0 : index
    %166 = vector.load %arg5[%c1_89, %c2_90, %165, %c0_91] : memref<4x4x8x128xf32, #tpu.memory_space<vmem>>, vector<1x1x8x128xf32>
    %167 = vector.shape_cast %166 : vector<1x1x8x128xf32> to vector<8x128xf32>
    %168 = arith.mulf %7, %164 : vector<8x128xf32>
    %169 = arith.addf %158, %168 : vector<8x128xf32>
    %170 = arith.mulf %19, %167 : vector<8x128xf32>
    %171 = arith.addf %169, %170 : vector<8x128xf32>
    %172 = arith.mulf %19, %164 : vector<8x128xf32>
    %173 = arith.addf %161, %172 : vector<8x128xf32>
    %174 = arith.mulf %7, %167 : vector<8x128xf32>
    %175 = arith.subf %173, %174 : vector<8x128xf32>
    %c2_92 = arith.constant 2 : index
    %c2_93 = arith.constant 2 : index
    %176 = arith.index_cast %1 : i32 to index
    %c0_94 = arith.constant 0 : index
    %177 = vector.load %arg4[%c2_92, %c2_93, %176, %c0_94] : memref<4x4x8x128xf32, #tpu.memory_space<vmem>>, vector<1x1x8x128xf32>
    %178 = vector.shape_cast %177 : vector<1x1x8x128xf32> to vector<8x128xf32>
    %c2_95 = arith.constant 2 : index
    %c2_96 = arith.constant 2 : index
    %179 = arith.index_cast %1 : i32 to index
    %c0_97 = arith.constant 0 : index
    %180 = vector.load %arg5[%c2_95, %c2_96, %179, %c0_97] : memref<4x4x8x128xf32, #tpu.memory_space<vmem>>, vector<1x1x8x128xf32>
    %181 = vector.shape_cast %180 : vector<1x1x8x128xf32> to vector<8x128xf32>
    %182 = arith.mulf %10, %178 : vector<8x128xf32>
    %183 = arith.addf %171, %182 : vector<8x128xf32>
    %184 = arith.mulf %22, %181 : vector<8x128xf32>
    %185 = arith.addf %183, %184 : vector<8x128xf32>
    %186 = arith.mulf %22, %178 : vector<8x128xf32>
    %187 = arith.addf %175, %186 : vector<8x128xf32>
    %188 = arith.mulf %10, %181 : vector<8x128xf32>
    %189 = arith.subf %187, %188 : vector<8x128xf32>
    %c3_98 = arith.constant 3 : index
    %c2_99 = arith.constant 2 : index
    %190 = arith.index_cast %1 : i32 to index
    %c0_100 = arith.constant 0 : index
    %191 = vector.load %arg4[%c3_98, %c2_99, %190, %c0_100] : memref<4x4x8x128xf32, #tpu.memory_space<vmem>>, vector<1x1x8x128xf32>
    %192 = vector.shape_cast %191 : vector<1x1x8x128xf32> to vector<8x128xf32>
    %c3_101 = arith.constant 3 : index
    %c2_102 = arith.constant 2 : index
    %193 = arith.index_cast %1 : i32 to index
    %c0_103 = arith.constant 0 : index
    %194 = vector.load %arg5[%c3_101, %c2_102, %193, %c0_103] : memref<4x4x8x128xf32, #tpu.memory_space<vmem>>, vector<1x1x8x128xf32>
    %195 = vector.shape_cast %194 : vector<1x1x8x128xf32> to vector<8x128xf32>
    %196 = arith.mulf %13, %192 : vector<8x128xf32>
    %197 = arith.addf %185, %196 : vector<8x128xf32>
    %198 = arith.mulf %25, %195 : vector<8x128xf32>
    %199 = arith.addf %197, %198 : vector<8x128xf32>
    %200 = arith.mulf %25, %192 : vector<8x128xf32>
    %201 = arith.addf %189, %200 : vector<8x128xf32>
    %202 = arith.mulf %13, %195 : vector<8x128xf32>
    %203 = arith.subf %201, %202 : vector<8x128xf32>
    %c0_104 = arith.constant 0 : index
    %c2_105 = arith.constant 2 : index
    %204 = arith.index_cast %1 : i32 to index
    %c0_106 = arith.constant 0 : index
    %205 = vector.load %arg6[%c0_104, %c2_105, %204, %c0_106] : memref<2x4x8x128xf32, #tpu.memory_space<vmem>>, vector<1x1x8x128xf32>
    %206 = vector.shape_cast %205 : vector<1x1x8x128xf32> to vector<8x128xf32>
    %207 = vector.shape_cast %199 : vector<8x128xf32> to vector<1x1x8x128xf32>
    tpu.vector_store %arg6[%c0_104, %c2_105, %204, %c0_106], %207 {strides = array<i32>} : memref<2x4x8x128xf32, #tpu.memory_space<vmem>>, vector<1x1x8x128xf32>,
    %c0_107 = arith.constant 0 : index
    %c2_108 = arith.constant 2 : index
    %208 = arith.index_cast %1 : i32 to index
    %c0_109 = arith.constant 0 : index
    %209 = vector.load %arg7[%c0_107, %c2_108, %208, %c0_109] : memref<2x4x8x128xf32, #tpu.memory_space<vmem>>, vector<1x1x8x128xf32>
    %210 = vector.shape_cast %209 : vector<1x1x8x128xf32> to vector<8x128xf32>
    %211 = vector.shape_cast %203 : vector<8x128xf32> to vector<1x1x8x128xf32>
    tpu.vector_store %arg7[%c0_107, %c2_108, %208, %c0_109], %211 {strides = array<i32>} : memref<2x4x8x128xf32, #tpu.memory_space<vmem>>, vector<1x1x8x128xf32>,
    %c0_110 = arith.constant 0 : index
    %c3_111 = arith.constant 3 : index
    %212 = arith.index_cast %1 : i32 to index
    %c0_112 = arith.constant 0 : index
    %213 = vector.load %arg4[%c0_110, %c3_111, %212, %c0_112] : memref<4x4x8x128xf32, #tpu.memory_space<vmem>>, vector<1x1x8x128xf32>
    %214 = vector.shape_cast %213 : vector<1x1x8x128xf32> to vector<8x128xf32>
    %c0_113 = arith.constant 0 : index
    %c3_114 = arith.constant 3 : index
    %215 = arith.index_cast %1 : i32 to index
    %c0_115 = arith.constant 0 : index
    %216 = vector.load %arg5[%c0_113, %c3_114, %215, %c0_115] : memref<4x4x8x128xf32, #tpu.memory_space<vmem>>, vector<1x1x8x128xf32>
    %217 = vector.shape_cast %216 : vector<1x1x8x128xf32> to vector<8x128xf32>
    %218 = arith.mulf %4, %214 : vector<8x128xf32>
    %219 = arith.mulf %16, %217 : vector<8x128xf32>
    %220 = arith.addf %218, %219 : vector<8x128xf32>
    %221 = arith.mulf %16, %214 : vector<8x128xf32>
    %222 = arith.mulf %4, %217 : vector<8x128xf32>
    %223 = arith.subf %221, %222 : vector<8x128xf32>
    %c1_116 = arith.constant 1 : index
    %c3_117 = arith.constant 3 : index
    %224 = arith.index_cast %1 : i32 to index
    %c0_118 = arith.constant 0 : index
    %225 = vector.load %arg4[%c1_116, %c3_117, %224, %c0_118] : memref<4x4x8x128xf32, #tpu.memory_space<vmem>>, vector<1x1x8x128xf32>
    %226 = vector.shape_cast %225 : vector<1x1x8x128xf32> to vector<8x128xf32>
    %c1_119 = arith.constant 1 : index
    %c3_120 = arith.constant 3 : index
    %227 = arith.index_cast %1 : i32 to index
    %c0_121 = arith.constant 0 : index
    %228 = vector.load %arg5[%c1_119, %c3_120, %227, %c0_121] : memref<4x4x8x128xf32, #tpu.memory_space<vmem>>, vector<1x1x8x128xf32>
    %229 = vector.shape_cast %228 : vector<1x1x8x128xf32> to vector<8x128xf32>
    %230 = arith.mulf %7, %226 : vector<8x128xf32>
    %231 = arith.addf %220, %230 : vector<8x128xf32>
    %232 = arith.mulf %19, %229 : vector<8x128xf32>
    %233 = arith.addf %231, %232 : vector<8x128xf32>
    %234 = arith.mulf %19, %226 : vector<8x128xf32>
    %235 = arith.addf %223, %234 : vector<8x128xf32>
    %236 = arith.mulf %7, %229 : vector<8x128xf32>
    %237 = arith.subf %235, %236 : vector<8x128xf32>
    %c2_122 = arith.constant 2 : index
    %c3_123 = arith.constant 3 : index
    %238 = arith.index_cast %1 : i32 to index
    %c0_124 = arith.constant 0 : index
    %239 = vector.load %arg4[%c2_122, %c3_123, %238, %c0_124] : memref<4x4x8x128xf32, #tpu.memory_space<vmem>>, vector<1x1x8x128xf32>
    %240 = vector.shape_cast %239 : vector<1x1x8x128xf32> to vector<8x128xf32>
    %c2_125 = arith.constant 2 : index
    %c3_126 = arith.constant 3 : index
    %241 = arith.index_cast %1 : i32 to index
    %c0_127 = arith.constant 0 : index
    %242 = vector.load %arg5[%c2_125, %c3_126, %241, %c0_127] : memref<4x4x8x128xf32, #tpu.memory_space<vmem>>, vector<1x1x8x128xf32>
    %243 = vector.shape_cast %242 : vector<1x1x8x128xf32> to vector<8x128xf32>
    %244 = arith.mulf %10, %240 : vector<8x128xf32>
    %245 = arith.addf %233, %244 : vector<8x128xf32>
    %246 = arith.mulf %22, %243 : vector<8x128xf32>
    %247 = arith.addf %245, %246 : vector<8x128xf32>
    %248 = arith.mulf %22, %240 : vector<8x128xf32>
    %249 = arith.addf %237, %248 : vector<8x128xf32>
    %250 = arith.mulf %10, %243 : vector<8x128xf32>
    %251 = arith.subf %249, %250 : vector<8x128xf32>
    %c3_128 = arith.constant 3 : index
    %c3_129 = arith.constant 3 : index
    %252 = arith.index_cast %1 : i32 to index
    %c0_130 = arith.constant 0 : index
    %253 = vector.load %arg4[%c3_128, %c3_129, %252, %c0_130] : memref<4x4x8x128xf32, #tpu.memory_space<vmem>>, vector<1x1x8x128xf32>
    %254 = vector.shape_cast %253 : vector<1x1x8x128xf32> to vector<8x128xf32>
    %c3_131 = arith.constant 3 : index
    %c3_132 = arith.constant 3 : index
    %255 = arith.index_cast %1 : i32 to index
    %c0_133 = arith.constant 0 : index
    %256 = vector.load %arg5[%c3_131, %c3_132, %255, %c0_133] : memref<4x4x8x128xf32, #tpu.memory_space<vmem>>, vector<1x1x8x128xf32>
    %257 = vector.shape_cast %256 : vector<1x1x8x128xf32> to vector<8x128xf32>
    %258 = arith.mulf %13, %254 : vector<8x128xf32>
    %259 = arith.addf %247, %258 : vector<8x128xf32>
    %260 = arith.mulf %25, %257 : vector<8x128xf32>
    %261 = arith.addf %259, %260 : vector<8x128xf32>
    %262 = arith.mulf %25, %254 : vector<8x128xf32>
    %263 = arith.addf %251, %262 : vector<8x128xf32>
    %264 = arith.mulf %13, %257 : vector<8x128xf32>
    %265 = arith.subf %263, %264 : vector<8x128xf32>
    %c0_134 = arith.constant 0 : index
    %c3_135 = arith.constant 3 : index
    %266 = arith.index_cast %1 : i32 to index
    %c0_136 = arith.constant 0 : index
    %267 = vector.load %arg6[%c0_134, %c3_135, %266, %c0_136] : memref<2x4x8x128xf32, #tpu.memory_space<vmem>>, vector<1x1x8x128xf32>
    %268 = vector.shape_cast %267 : vector<1x1x8x128xf32> to vector<8x128xf32>
    %269 = vector.shape_cast %261 : vector<8x128xf32> to vector<1x1x8x128xf32>
    tpu.vector_store %arg6[%c0_134, %c3_135, %266, %c0_136], %269 {strides = array<i32>} : memref<2x4x8x128xf32, #tpu.memory_space<vmem>>, vector<1x1x8x128xf32>,
    %c0_137 = arith.constant 0 : index
    %c3_138 = arith.constant 3 : index
    %270 = arith.index_cast %1 : i32 to index
    %c0_139 = arith.constant 0 : index
    %271 = vector.load %arg7[%c0_137, %c3_138, %270, %c0_139] : memref<2x4x8x128xf32, #tpu.memory_space<vmem>>, vector<1x1x8x128xf32>
    %272 = vector.shape_cast %271 : vector<1x1x8x128xf32> to vector<8x128xf32>
    %273 = vector.shape_cast %265 : vector<8x128xf32> to vector<1x1x8x128xf32>
    tpu.vector_store %arg7[%c0_137, %c3_138, %270, %c0_139], %273 {strides = array<i32>} : memref<2x4x8x128xf32, #tpu.memory_space<vmem>>, vector<1x1x8x128xf32>,
    %c1_140 = arith.constant 1 : index
    %c0_141 = arith.constant 0 : index
    %274 = arith.index_cast %1 : i32 to index
    %c0_142 = arith.constant 0 : index
    %275 = vector.load %arg2[%c1_140, %c0_141, %274, %c0_142] : memref<2x4x8x128xf32, #tpu.memory_space<vmem>>, vector<1x1x8x128xf32>
    %276 = vector.shape_cast %275 : vector<1x1x8x128xf32> to vector<8x128xf32>
    %c1_143 = arith.constant 1 : index
    %c1_144 = arith.constant 1 : index
    %277 = arith.index_cast %1 : i32 to index
    %c0_145 = arith.constant 0 : index
    %278 = vector.load %arg2[%c1_143, %c1_144, %277, %c0_145] : memref<2x4x8x128xf32, #tpu.memory_space<vmem>>, vector<1x1x8x128xf32>
    %279 = vector.shape_cast %278 : vector<1x1x8x128xf32> to vector<8x128xf32>
    %c1_146 = arith.constant 1 : index
    %c2_147 = arith.constant 2 : index
    %280 = arith.index_cast %1 : i32 to index
    %c0_148 = arith.constant 0 : index
    %281 = vector.load %arg2[%c1_146, %c2_147, %280, %c0_148] : memref<2x4x8x128xf32, #tpu.memory_space<vmem>>, vector<1x1x8x128xf32>
    %282 = vector.shape_cast %281 : vector<1x1x8x128xf32> to vector<8x128xf32>
    %c1_149 = arith.constant 1 : index
    %c3_150 = arith.constant 3 : index
    %283 = arith.index_cast %1 : i32 to index
    %c0_151 = arith.constant 0 : index
    %284 = vector.load %arg2[%c1_149, %c3_150, %283, %c0_151] : memref<2x4x8x128xf32, #tpu.memory_space<vmem>>, vector<1x1x8x128xf32>
    %285 = vector.shape_cast %284 : vector<1x1x8x128xf32> to vector<8x128xf32>
    %c1_152 = arith.constant 1 : index
    %c0_153 = arith.constant 0 : index
    %286 = arith.index_cast %1 : i32 to index
    %c0_154 = arith.constant 0 : index
    %287 = vector.load %arg3[%c1_152, %c0_153, %286, %c0_154] : memref<2x4x8x128xf32, #tpu.memory_space<vmem>>, vector<1x1x8x128xf32>
    %288 = vector.shape_cast %287 : vector<1x1x8x128xf32> to vector<8x128xf32>
    %c1_155 = arith.constant 1 : index
    %c1_156 = arith.constant 1 : index
    %289 = arith.index_cast %1 : i32 to index
    %c0_157 = arith.constant 0 : index
    %290 = vector.load %arg3[%c1_155, %c1_156, %289, %c0_157] : memref<2x4x8x128xf32, #tpu.memory_space<vmem>>, vector<1x1x8x128xf32>
    %291 = vector.shape_cast %290 : vector<1x1x8x128xf32> to vector<8x128xf32>
    %c1_158 = arith.constant 1 : index
    %c2_159 = arith.constant 2 : index
    %292 = arith.index_cast %1 : i32 to index
    %c0_160 = arith.constant 0 : index
    %293 = vector.load %arg3[%c1_158, %c2_159, %292, %c0_160] : memref<2x4x8x128xf32, #tpu.memory_space<vmem>>, vector<1x1x8x128xf32>
    %294 = vector.shape_cast %293 : vector<1x1x8x128xf32> to vector<8x128xf32>
    %c1_161 = arith.constant 1 : index
    %c3_162 = arith.constant 3 : index
    %295 = arith.index_cast %1 : i32 to index
    %c0_163 = arith.constant 0 : index
    %296 = vector.load %arg3[%c1_161, %c3_162, %295, %c0_163] : memref<2x4x8x128xf32, #tpu.memory_space<vmem>>, vector<1x1x8x128xf32>
    %297 = vector.shape_cast %296 : vector<1x1x8x128xf32> to vector<8x128xf32>
    %c0_164 = arith.constant 0 : index
    %c0_165 = arith.constant 0 : index
    %298 = arith.index_cast %1 : i32 to index
    %c0_166 = arith.constant 0 : index
    %299 = vector.load %arg4[%c0_164, %c0_165, %298, %c0_166] : memref<4x4x8x128xf32, #tpu.memory_space<vmem>>, vector<1x1x8x128xf32>
    %300 = vector.shape_cast %299 : vector<1x1x8x128xf32> to vector<8x128xf32>
    %c0_167 = arith.constant 0 : index
    %c0_168 = arith.constant 0 : index
    %301 = arith.index_cast %1 : i32 to index
    %c0_169 = arith.constant 0 : index
    %302 = vector.load %arg5[%c0_167, %c0_168, %301, %c0_169] : memref<4x4x8x128xf32, #tpu.memory_space<vmem>>, vector<1x1x8x128xf32>
    %303 = vector.shape_cast %302 : vector<1x1x8x128xf32> to vector<8x128xf32>
    %304 = arith.mulf %276, %300 : vector<8x128xf32>
    %305 = arith.mulf %288, %303 : vector<8x128xf32>
    %306 = arith.addf %304, %305 : vector<8x128xf32>
    %307 = arith.mulf %288, %300 : vector<8x128xf32>
    %308 = arith.mulf %276, %303 : vector<8x128xf32>
    %309 = arith.subf %307, %308 : vector<8x128xf32>
    %c1_170 = arith.constant 1 : index
    %c0_171 = arith.constant 0 : index
    %310 = arith.index_cast %1 : i32 to index
    %c0_172 = arith.constant 0 : index
    %311 = vector.load %arg4[%c1_170, %c0_171, %310, %c0_172] : memref<4x4x8x128xf32, #tpu.memory_space<vmem>>, vector<1x1x8x128xf32>
    %312 = vector.shape_cast %311 : vector<1x1x8x128xf32> to vector<8x128xf32>
    %c1_173 = arith.constant 1 : index
    %c0_174 = arith.constant 0 : index
    %313 = arith.index_cast %1 : i32 to index
    %c0_175 = arith.constant 0 : index
    %314 = vector.load %arg5[%c1_173, %c0_174, %313, %c0_175] : memref<4x4x8x128xf32, #tpu.memory_space<vmem>>, vector<1x1x8x128xf32>
    %315 = vector.shape_cast %314 : vector<1x1x8x128xf32> to vector<8x128xf32>
    %316 = arith.mulf %279, %312 : vector<8x128xf32>
    %317 = arith.addf %306, %316 : vector<8x128xf32>
    %318 = arith.mulf %291, %315 : vector<8x128xf32>
    %319 = arith.addf %317, %318 : vector<8x128xf32>
    %320 = arith.mulf %291, %312 : vector<8x128xf32>
    %321 = arith.addf %309, %320 : vector<8x128xf32>
    %322 = arith.mulf %279, %315 : vector<8x128xf32>
    %323 = arith.subf %321, %322 : vector<8x128xf32>
    %c2_176 = arith.constant 2 : index
    %c0_177 = arith.constant 0 : index
    %324 = arith.index_cast %1 : i32 to index
    %c0_178 = arith.constant 0 : index
    %325 = vector.load %arg4[%c2_176, %c0_177, %324, %c0_178] : memref<4x4x8x128xf32, #tpu.memory_space<vmem>>, vector<1x1x8x128xf32>
    %326 = vector.shape_cast %325 : vector<1x1x8x128xf32> to vector<8x128xf32>
    %c2_179 = arith.constant 2 : index
    %c0_180 = arith.constant 0 : index
    %327 = arith.index_cast %1 : i32 to index
    %c0_181 = arith.constant 0 : index
    %328 = vector.load %arg5[%c2_179, %c0_180, %327, %c0_181] : memref<4x4x8x128xf32, #tpu.memory_space<vmem>>, vector<1x1x8x128xf32>
    %329 = vector.shape_cast %328 : vector<1x1x8x128xf32> to vector<8x128xf32>
    %330 = arith.mulf %282, %326 : vector<8x128xf32>
    %331 = arith.addf %319, %330 : vector<8x128xf32>
    %332 = arith.mulf %294, %329 : vector<8x128xf32>
    %333 = arith.addf %331, %332 : vector<8x128xf32>
    %334 = arith.mulf %294, %326 : vector<8x128xf32>
    %335 = arith.addf %323, %334 : vector<8x128xf32>
    %336 = arith.mulf %282, %329 : vector<8x128xf32>
    %337 = arith.subf %335, %336 : vector<8x128xf32>
    %c3_182 = arith.constant 3 : index
    %c0_183 = arith.constant 0 : index
    %338 = arith.index_cast %1 : i32 to index
    %c0_184 = arith.constant 0 : index
    %339 = vector.load %arg4[%c3_182, %c0_183, %338, %c0_184] : memref<4x4x8x128xf32, #tpu.memory_space<vmem>>, vector<1x1x8x128xf32>
    %340 = vector.shape_cast %339 : vector<1x1x8x128xf32> to vector<8x128xf32>
    %c3_185 = arith.constant 3 : index
    %c0_186 = arith.constant 0 : index
    %341 = arith.index_cast %1 : i32 to index
    %c0_187 = arith.constant 0 : index
    %342 = vector.load %arg5[%c3_185, %c0_186, %341, %c0_187] : memref<4x4x8x128xf32, #tpu.memory_space<vmem>>, vector<1x1x8x128xf32>
    %343 = vector.shape_cast %342 : vector<1x1x8x128xf32> to vector<8x128xf32>
    %344 = arith.mulf %285, %340 : vector<8x128xf32>
    %345 = arith.addf %333, %344 : vector<8x128xf32>
    %346 = arith.mulf %297, %343 : vector<8x128xf32>
    %347 = arith.addf %345, %346 : vector<8x128xf32>
    %348 = arith.mulf %297, %340 : vector<8x128xf32>
    %349 = arith.addf %337, %348 : vector<8x128xf32>
    %350 = arith.mulf %285, %343 : vector<8x128xf32>
    %351 = arith.subf %349, %350 : vector<8x128xf32>
    %c1_188 = arith.constant 1 : index
    %c0_189 = arith.constant 0 : index
    %352 = arith.index_cast %1 : i32 to index
    %c0_190 = arith.constant 0 : index
    %353 = vector.load %arg6[%c1_188, %c0_189, %352, %c0_190] : memref<2x4x8x128xf32, #tpu.memory_space<vmem>>, vector<1x1x8x128xf32>
    %354 = vector.shape_cast %353 : vector<1x1x8x128xf32> to vector<8x128xf32>
    %355 = vector.shape_cast %347 : vector<8x128xf32> to vector<1x1x8x128xf32>
    tpu.vector_store %arg6[%c1_188, %c0_189, %352, %c0_190], %355 {strides = array<i32>} : memref<2x4x8x128xf32, #tpu.memory_space<vmem>>, vector<1x1x8x128xf32>,
    %c1_191 = arith.constant 1 : index
    %c0_192 = arith.constant 0 : index
    %356 = arith.index_cast %1 : i32 to index
    %c0_193 = arith.constant 0 : index
    %357 = vector.load %arg7[%c1_191, %c0_192, %356, %c0_193] : memref<2x4x8x128xf32, #tpu.memory_space<vmem>>, vector<1x1x8x128xf32>
    %358 = vector.shape_cast %357 : vector<1x1x8x128xf32> to vector<8x128xf32>
    %359 = vector.shape_cast %351 : vector<8x128xf32> to vector<1x1x8x128xf32>
    tpu.vector_store %arg7[%c1_191, %c0_192, %356, %c0_193], %359 {strides = array<i32>} : memref<2x4x8x128xf32, #tpu.memory_space<vmem>>, vector<1x1x8x128xf32>,
    %c0_194 = arith.constant 0 : index
    %c1_195 = arith.constant 1 : index
    %360 = arith.index_cast %1 : i32 to index
    %c0_196 = arith.constant 0 : index
    %361 = vector.load %arg4[%c0_194, %c1_195, %360, %c0_196] : memref<4x4x8x128xf32, #tpu.memory_space<vmem>>, vector<1x1x8x128xf32>
    %362 = vector.shape_cast %361 : vector<1x1x8x128xf32> to vector<8x128xf32>
    %c0_197 = arith.constant 0 : index
    %c1_198 = arith.constant 1 : index
    %363 = arith.index_cast %1 : i32 to index
    %c0_199 = arith.constant 0 : index
    %364 = vector.load %arg5[%c0_197, %c1_198, %363, %c0_199] : memref<4x4x8x128xf32, #tpu.memory_space<vmem>>, vector<1x1x8x128xf32>
    %365 = vector.shape_cast %364 : vector<1x1x8x128xf32> to vector<8x128xf32>
    %366 = arith.mulf %276, %362 : vector<8x128xf32>
    %367 = arith.mulf %288, %365 : vector<8x128xf32>
    %368 = arith.addf %366, %367 : vector<8x128xf32>
    %369 = arith.mulf %288, %362 : vector<8x128xf32>
    %370 = arith.mulf %276, %365 : vector<8x128xf32>
    %371 = arith.subf %369, %370 : vector<8x128xf32>
    %c1_200 = arith.constant 1 : index
    %c1_201 = arith.constant 1 : index
    %372 = arith.index_cast %1 : i32 to index
    %c0_202 = arith.constant 0 : index
    %373 = vector.load %arg4[%c1_200, %c1_201, %372, %c0_202] : memref<4x4x8x128xf32, #tpu.memory_space<vmem>>, vector<1x1x8x128xf32>
    %374 = vector.shape_cast %373 : vector<1x1x8x128xf32> to vector<8x128xf32>
    %c1_203 = arith.constant 1 : index
    %c1_204 = arith.constant 1 : index
    %375 = arith.index_cast %1 : i32 to index
    %c0_205 = arith.constant 0 : index
    %376 = vector.load %arg5[%c1_203, %c1_204, %375, %c0_205] : memref<4x4x8x128xf32, #tpu.memory_space<vmem>>, vector<1x1x8x128xf32>
    %377 = vector.shape_cast %376 : vector<1x1x8x128xf32> to vector<8x128xf32>
    %378 = arith.mulf %279, %374 : vector<8x128xf32>
    %379 = arith.addf %368, %378 : vector<8x128xf32>
    %380 = arith.mulf %291, %377 : vector<8x128xf32>
    %381 = arith.addf %379, %380 : vector<8x128xf32>
    %382 = arith.mulf %291, %374 : vector<8x128xf32>
    %383 = arith.addf %371, %382 : vector<8x128xf32>
    %384 = arith.mulf %279, %377 : vector<8x128xf32>
    %385 = arith.subf %383, %384 : vector<8x128xf32>
    %c2_206 = arith.constant 2 : index
    %c1_207 = arith.constant 1 : index
    %386 = arith.index_cast %1 : i32 to index
    %c0_208 = arith.constant 0 : index
    %387 = vector.load %arg4[%c2_206, %c1_207, %386, %c0_208] : memref<4x4x8x128xf32, #tpu.memory_space<vmem>>, vector<1x1x8x128xf32>
    %388 = vector.shape_cast %387 : vector<1x1x8x128xf32> to vector<8x128xf32>
    %c2_209 = arith.constant 2 : index
    %c1_210 = arith.constant 1 : index
    %389 = arith.index_cast %1 : i32 to index
    %c0_211 = arith.constant 0 : index
    %390 = vector.load %arg5[%c2_209, %c1_210, %389, %c0_211] : memref<4x4x8x128xf32, #tpu.memory_space<vmem>>, vector<1x1x8x128xf32>
    %391 = vector.shape_cast %390 : vector<1x1x8x128xf32> to vector<8x128xf32>
    %392 = arith.mulf %282, %388 : vector<8x128xf32>
    %393 = arith.addf %381, %392 : vector<8x128xf32>
    %394 = arith.mulf %294, %391 : vector<8x128xf32>
    %395 = arith.addf %393, %394 : vector<8x128xf32>
    %396 = arith.mulf %294, %388 : vector<8x128xf32>
    %397 = arith.addf %385, %396 : vector<8x128xf32>
    %398 = arith.mulf %282, %391 : vector<8x128xf32>
    %399 = arith.subf %397, %398 : vector<8x128xf32>
    %c3_212 = arith.constant 3 : index
    %c1_213 = arith.constant 1 : index
    %400 = arith.index_cast %1 : i32 to index
    %c0_214 = arith.constant 0 : index
    %401 = vector.load %arg4[%c3_212, %c1_213, %400, %c0_214] : memref<4x4x8x128xf32, #tpu.memory_space<vmem>>, vector<1x1x8x128xf32>
    %402 = vector.shape_cast %401 : vector<1x1x8x128xf32> to vector<8x128xf32>
    %c3_215 = arith.constant 3 : index
    %c1_216 = arith.constant 1 : index
    %403 = arith.index_cast %1 : i32 to index
    %c0_217 = arith.constant 0 : index
    %404 = vector.load %arg5[%c3_215, %c1_216, %403, %c0_217] : memref<4x4x8x128xf32, #tpu.memory_space<vmem>>, vector<1x1x8x128xf32>
    %405 = vector.shape_cast %404 : vector<1x1x8x128xf32> to vector<8x128xf32>
    %406 = arith.mulf %285, %402 : vector<8x128xf32>
    %407 = arith.addf %395, %406 : vector<8x128xf32>
    %408 = arith.mulf %297, %405 : vector<8x128xf32>
    %409 = arith.addf %407, %408 : vector<8x128xf32>
    %410 = arith.mulf %297, %402 : vector<8x128xf32>
    %411 = arith.addf %399, %410 : vector<8x128xf32>
    %412 = arith.mulf %285, %405 : vector<8x128xf32>
    %413 = arith.subf %411, %412 : vector<8x128xf32>
    %c1_218 = arith.constant 1 : index
    %c1_219 = arith.constant 1 : index
    %414 = arith.index_cast %1 : i32 to index
    %c0_220 = arith.constant 0 : index
    %415 = vector.load %arg6[%c1_218, %c1_219, %414, %c0_220] : memref<2x4x8x128xf32, #tpu.memory_space<vmem>>, vector<1x1x8x128xf32>
    %416 = vector.shape_cast %415 : vector<1x1x8x128xf32> to vector<8x128xf32>
    %417 = vector.shape_cast %409 : vector<8x128xf32> to vector<1x1x8x128xf32>
    tpu.vector_store %arg6[%c1_218, %c1_219, %414, %c0_220], %417 {strides = array<i32>} : memref<2x4x8x128xf32, #tpu.memory_space<vmem>>, vector<1x1x8x128xf32>,
    %c1_221 = arith.constant 1 : index
    %c1_222 = arith.constant 1 : index
    %418 = arith.index_cast %1 : i32 to index
    %c0_223 = arith.constant 0 : index
    %419 = vector.load %arg7[%c1_221, %c1_222, %418, %c0_223] : memref<2x4x8x128xf32, #tpu.memory_space<vmem>>, vector<1x1x8x128xf32>
    %420 = vector.shape_cast %419 : vector<1x1x8x128xf32> to vector<8x128xf32>
    %421 = vector.shape_cast %413 : vector<8x128xf32> to vector<1x1x8x128xf32>
    tpu.vector_store %arg7[%c1_221, %c1_222, %418, %c0_223], %421 {strides = array<i32>} : memref<2x4x8x128xf32, #tpu.memory_space<vmem>>, vector<1x1x8x128xf32>,
    %c0_224 = arith.constant 0 : index
    %c2_225 = arith.constant 2 : index
    %422 = arith.index_cast %1 : i32 to index
    %c0_226 = arith.constant 0 : index
    %423 = vector.load %arg4[%c0_224, %c2_225, %422, %c0_226] : memref<4x4x8x128xf32, #tpu.memory_space<vmem>>, vector<1x1x8x128xf32>
    %424 = vector.shape_cast %423 : vector<1x1x8x128xf32> to vector<8x128xf32>
    %c0_227 = arith.constant 0 : index
    %c2_228 = arith.constant 2 : index
    %425 = arith.index_cast %1 : i32 to index
    %c0_229 = arith.constant 0 : index
    %426 = vector.load %arg5[%c0_227, %c2_228, %425, %c0_229] : memref<4x4x8x128xf32, #tpu.memory_space<vmem>>, vector<1x1x8x128xf32>
    %427 = vector.shape_cast %426 : vector<1x1x8x128xf32> to vector<8x128xf32>
    %428 = arith.mulf %276, %424 : vector<8x128xf32>
    %429 = arith.mulf %288, %427 : vector<8x128xf32>
    %430 = arith.addf %428, %429 : vector<8x128xf32>
    %431 = arith.mulf %288, %424 : vector<8x128xf32>
    %432 = arith.mulf %276, %427 : vector<8x128xf32>
    %433 = arith.subf %431, %432 : vector<8x128xf32>
    %c1_230 = arith.constant 1 : index
    %c2_231 = arith.constant 2 : index
    %434 = arith.index_cast %1 : i32 to index
    %c0_232 = arith.constant 0 : index
    %435 = vector.load %arg4[%c1_230, %c2_231, %434, %c0_232] : memref<4x4x8x128xf32, #tpu.memory_space<vmem>>, vector<1x1x8x128xf32>
    %436 = vector.shape_cast %435 : vector<1x1x8x128xf32> to vector<8x128xf32>
    %c1_233 = arith.constant 1 : index
    %c2_234 = arith.constant 2 : index
    %437 = arith.index_cast %1 : i32 to index
    %c0_235 = arith.constant 0 : index
    %438 = vector.load %arg5[%c1_233, %c2_234, %437, %c0_235] : memref<4x4x8x128xf32, #tpu.memory_space<vmem>>, vector<1x1x8x128xf32>
    %439 = vector.shape_cast %438 : vector<1x1x8x128xf32> to vector<8x128xf32>
    %440 = arith.mulf %279, %436 : vector<8x128xf32>
    %441 = arith.addf %430, %440 : vector<8x128xf32>
    %442 = arith.mulf %291, %439 : vector<8x128xf32>
    %443 = arith.addf %441, %442 : vector<8x128xf32>
    %444 = arith.mulf %291, %436 : vector<8x128xf32>
    %445 = arith.addf %433, %444 : vector<8x128xf32>
    %446 = arith.mulf %279, %439 : vector<8x128xf32>
    %447 = arith.subf %445, %446 : vector<8x128xf32>
    %c2_236 = arith.constant 2 : index
    %c2_237 = arith.constant 2 : index
    %448 = arith.index_cast %1 : i32 to index
    %c0_238 = arith.constant 0 : index
    %449 = vector.load %arg4[%c2_236, %c2_237, %448, %c0_238] : memref<4x4x8x128xf32, #tpu.memory_space<vmem>>, vector<1x1x8x128xf32>
    %450 = vector.shape_cast %449 : vector<1x1x8x128xf32> to vector<8x128xf32>
    %c2_239 = arith.constant 2 : index
    %c2_240 = arith.constant 2 : index
    %451 = arith.index_cast %1 : i32 to index
    %c0_241 = arith.constant 0 : index
    %452 = vector.load %arg5[%c2_239, %c2_240, %451, %c0_241] : memref<4x4x8x128xf32, #tpu.memory_space<vmem>>, vector<1x1x8x128xf32>
    %453 = vector.shape_cast %452 : vector<1x1x8x128xf32> to vector<8x128xf32>
    %454 = arith.mulf %282, %450 : vector<8x128xf32>
    %455 = arith.addf %443, %454 : vector<8x128xf32>
    %456 = arith.mulf %294, %453 : vector<8x128xf32>
    %457 = arith.addf %455, %456 : vector<8x128xf32>
    %458 = arith.mulf %294, %450 : vector<8x128xf32>
    %459 = arith.addf %447, %458 : vector<8x128xf32>
    %460 = arith.mulf %282, %453 : vector<8x128xf32>
    %461 = arith.subf %459, %460 : vector<8x128xf32>
    %c3_242 = arith.constant 3 : index
    %c2_243 = arith.constant 2 : index
    %462 = arith.index_cast %1 : i32 to index
    %c0_244 = arith.constant 0 : index
    %463 = vector.load %arg4[%c3_242, %c2_243, %462, %c0_244] : memref<4x4x8x128xf32, #tpu.memory_space<vmem>>, vector<1x1x8x128xf32>
    %464 = vector.shape_cast %463 : vector<1x1x8x128xf32> to vector<8x128xf32>
    %c3_245 = arith.constant 3 : index
    %c2_246 = arith.constant 2 : index
    %465 = arith.index_cast %1 : i32 to index
    %c0_247 = arith.constant 0 : index
    %466 = vector.load %arg5[%c3_245, %c2_246, %465, %c0_247] : memref<4x4x8x128xf32, #tpu.memory_space<vmem>>, vector<1x1x8x128xf32>
    %467 = vector.shape_cast %466 : vector<1x1x8x128xf32> to vector<8x128xf32>
    %468 = arith.mulf %285, %464 : vector<8x128xf32>
    %469 = arith.addf %457, %468 : vector<8x128xf32>
    %470 = arith.mulf %297, %467 : vector<8x128xf32>
    %471 = arith.addf %469, %470 : vector<8x128xf32>
    %472 = arith.mulf %297, %464 : vector<8x128xf32>
    %473 = arith.addf %461, %472 : vector<8x128xf32>
    %474 = arith.mulf %285, %467 : vector<8x128xf32>
    %475 = arith.subf %473, %474 : vector<8x128xf32>
    %c1_248 = arith.constant 1 : index
    %c2_249 = arith.constant 2 : index
    %476 = arith.index_cast %1 : i32 to index
    %c0_250 = arith.constant 0 : index
    %477 = vector.load %arg6[%c1_248, %c2_249, %476, %c0_250] : memref<2x4x8x128xf32, #tpu.memory_space<vmem>>, vector<1x1x8x128xf32>
    %478 = vector.shape_cast %477 : vector<1x1x8x128xf32> to vector<8x128xf32>
    %479 = vector.shape_cast %471 : vector<8x128xf32> to vector<1x1x8x128xf32>
    tpu.vector_store %arg6[%c1_248, %c2_249, %476, %c0_250], %479 {strides = array<i32>} : memref<2x4x8x128xf32, #tpu.memory_space<vmem>>, vector<1x1x8x128xf32>,
    %c1_251 = arith.constant 1 : index
    %c2_252 = arith.constant 2 : index
    %480 = arith.index_cast %1 : i32 to index
    %c0_253 = arith.constant 0 : index
    %481 = vector.load %arg7[%c1_251, %c2_252, %480, %c0_253] : memref<2x4x8x128xf32, #tpu.memory_space<vmem>>, vector<1x1x8x128xf32>
    %482 = vector.shape_cast %481 : vector<1x1x8x128xf32> to vector<8x128xf32>
    %483 = vector.shape_cast %475 : vector<8x128xf32> to vector<1x1x8x128xf32>
    tpu.vector_store %arg7[%c1_251, %c2_252, %480, %c0_253], %483 {strides = array<i32>} : memref<2x4x8x128xf32, #tpu.memory_space<vmem>>, vector<1x1x8x128xf32>,
    %c0_254 = arith.constant 0 : index
    %c3_255 = arith.constant 3 : index
    %484 = arith.index_cast %1 : i32 to index
    %c0_256 = arith.constant 0 : index
    %485 = vector.load %arg4[%c0_254, %c3_255, %484, %c0_256] : memref<4x4x8x128xf32, #tpu.memory_space<vmem>>, vector<1x1x8x128xf32>
    %486 = vector.shape_cast %485 : vector<1x1x8x128xf32> to vector<8x128xf32>
    %c0_257 = arith.constant 0 : index
    %c3_258 = arith.constant 3 : index
    %487 = arith.index_cast %1 : i32 to index
    %c0_259 = arith.constant 0 : index
    %488 = vector.load %arg5[%c0_257, %c3_258, %487, %c0_259] : memref<4x4x8x128xf32, #tpu.memory_space<vmem>>, vector<1x1x8x128xf32>
    %489 = vector.shape_cast %488 : vector<1x1x8x128xf32> to vector<8x128xf32>
    %490 = arith.mulf %276, %486 : vector<8x128xf32>
    %491 = arith.mulf %288, %489 : vector<8x128xf32>
    %492 = arith.addf %490, %491 : vector<8x128xf32>
    %493 = arith.mulf %288, %486 : vector<8x128xf32>
    %494 = arith.mulf %276, %489 : vector<8x128xf32>
    %495 = arith.subf %493, %494 : vector<8x128xf32>
    %c1_260 = arith.constant 1 : index
    %c3_261 = arith.constant 3 : index
    %496 = arith.index_cast %1 : i32 to index
    %c0_262 = arith.constant 0 : index
    %497 = vector.load %arg4[%c1_260, %c3_261, %496, %c0_262] : memref<4x4x8x128xf32, #tpu.memory_space<vmem>>, vector<1x1x8x128xf32>
    %498 = vector.shape_cast %497 : vector<1x1x8x128xf32> to vector<8x128xf32>
    %c1_263 = arith.constant 1 : index
    %c3_264 = arith.constant 3 : index
    %499 = arith.index_cast %1 : i32 to index
    %c0_265 = arith.constant 0 : index
    %500 = vector.load %arg5[%c1_263, %c3_264, %499, %c0_265] : memref<4x4x8x128xf32, #tpu.memory_space<vmem>>, vector<1x1x8x128xf32>
    %501 = vector.shape_cast %500 : vector<1x1x8x128xf32> to vector<8x128xf32>
    %502 = arith.mulf %279, %498 : vector<8x128xf32>
    %503 = arith.addf %492, %502 : vector<8x128xf32>
    %504 = arith.mulf %291, %501 : vector<8x128xf32>
    %505 = arith.addf %503, %504 : vector<8x128xf32>
    %506 = arith.mulf %291, %498 : vector<8x128xf32>
    %507 = arith.addf %495, %506 : vector<8x128xf32>
    %508 = arith.mulf %279, %501 : vector<8x128xf32>
    %509 = arith.subf %507, %508 : vector<8x128xf32>
    %c2_266 = arith.constant 2 : index
    %c3_267 = arith.constant 3 : index
    %510 = arith.index_cast %1 : i32 to index
    %c0_268 = arith.constant 0 : index
    %511 = vector.load %arg4[%c2_266, %c3_267, %510, %c0_268] : memref<4x4x8x128xf32, #tpu.memory_space<vmem>>, vector<1x1x8x128xf32>
    %512 = vector.shape_cast %511 : vector<1x1x8x128xf32> to vector<8x128xf32>
    %c2_269 = arith.constant 2 : index
    %c3_270 = arith.constant 3 : index
    %513 = arith.index_cast %1 : i32 to index
    %c0_271 = arith.constant 0 : index
    %514 = vector.load %arg5[%c2_269, %c3_270, %513, %c0_271] : memref<4x4x8x128xf32, #tpu.memory_space<vmem>>, vector<1x1x8x128xf32>
    %515 = vector.shape_cast %514 : vector<1x1x8x128xf32> to vector<8x128xf32>
    %516 = arith.mulf %282, %512 : vector<8x128xf32>
    %517 = arith.addf %505, %516 : vector<8x128xf32>
    %518 = arith.mulf %294, %515 : vector<8x128xf32>
    %519 = arith.addf %517, %518 : vector<8x128xf32>
    %520 = arith.mulf %294, %512 : vector<8x128xf32>
    %521 = arith.addf %509, %520 : vector<8x128xf32>
    %522 = arith.mulf %282, %515 : vector<8x128xf32>
    %523 = arith.subf %521, %522 : vector<8x128xf32>
    %c3_272 = arith.constant 3 : index
    %c3_273 = arith.constant 3 : index
    %524 = arith.index_cast %1 : i32 to index
    %c0_274 = arith.constant 0 : index
    %525 = vector.load %arg4[%c3_272, %c3_273, %524, %c0_274] : memref<4x4x8x128xf32, #tpu.memory_space<vmem>>, vector<1x1x8x128xf32>
    %526 = vector.shape_cast %525 : vector<1x1x8x128xf32> to vector<8x128xf32>
    %c3_275 = arith.constant 3 : index
    %c3_276 = arith.constant 3 : index
    %527 = arith.index_cast %1 : i32 to index
    %c0_277 = arith.constant 0 : index
    %528 = vector.load %arg5[%c3_275, %c3_276, %527, %c0_277] : memref<4x4x8x128xf32, #tpu.memory_space<vmem>>, vector<1x1x8x128xf32>
    %529 = vector.shape_cast %528 : vector<1x1x8x128xf32> to vector<8x128xf32>
    %530 = arith.mulf %285, %526 : vector<8x128xf32>
    %531 = arith.addf %519, %530 : vector<8x128xf32>
    %532 = arith.mulf %297, %529 : vector<8x128xf32>
    %533 = arith.addf %531, %532 : vector<8x128xf32>
    %534 = arith.mulf %297, %526 : vector<8x128xf32>
    %535 = arith.addf %523, %534 : vector<8x128xf32>
    %536 = arith.mulf %285, %529 : vector<8x128xf32>
    %537 = arith.subf %535, %536 : vector<8x128xf32>
    %c1_278 = arith.constant 1 : index
    %c3_279 = arith.constant 3 : index
    %538 = arith.index_cast %1 : i32 to index
    %c0_280 = arith.constant 0 : index
    %539 = vector.load %arg6[%c1_278, %c3_279, %538, %c0_280] : memref<2x4x8x128xf32, #tpu.memory_space<vmem>>, vector<1x1x8x128xf32>
    %540 = vector.shape_cast %539 : vector<1x1x8x128xf32> to vector<8x128xf32>
    %541 = vector.shape_cast %533 : vector<8x128xf32> to vector<1x1x8x128xf32>
    tpu.vector_store %arg6[%c1_278, %c3_279, %538, %c0_280], %541 {strides = array<i32>} : memref<2x4x8x128xf32, #tpu.memory_space<vmem>>, vector<1x1x8x128xf32>,
    %c1_281 = arith.constant 1 : index
    %c3_282 = arith.constant 3 : index
    %542 = arith.index_cast %1 : i32 to index
    %c0_283 = arith.constant 0 : index
    %543 = vector.load %arg7[%c1_281, %c3_282, %542, %c0_283] : memref<2x4x8x128xf32, #tpu.memory_space<vmem>>, vector<1x1x8x128xf32>
    %544 = vector.shape_cast %543 : vector<1x1x8x128xf32> to vector<8x128xf32>
    %545 = vector.shape_cast %537 : vector<8x128xf32> to vector<1x1x8x128xf32>
    tpu.vector_store %arg7[%c1_281, %c3_282, %542, %c0_283], %545 {strides = array<i32>} : memref<2x4x8x128xf32, #tpu.memory_space<vmem>>, vector<1x1x8x128xf32>,
    %c1_i32 = arith.constant 1 : i32
    return
  }
  func.func @transform_0(%arg0: i32, %arg1: i32) -> (i32, i32, i32, i32) {
    %c0_i32 = arith.constant 0 : i32
    %c0_i32_0 = arith.constant 0 : i32
    %c0_i32_1 = arith.constant 0 : i32
    return %arg1, %c0_i32, %arg0, %c0_i32_0 : i32, i32, i32, i32
  }
  func.func @transform_1(%arg0: i32, %arg1: i32) -> (i32, i32, i32, i32) {
    %c0_i32 = arith.constant 0 : i32
    %c0_i32_0 = arith.constant 0 : i32
    %c0_i32_1 = arith.constant 0 : i32
    return %arg1, %c0_i32, %arg0, %c0_i32_0 : i32, i32, i32, i32
  }
  func.func @transform_2(%arg0: i32, %arg1: i32) -> (i32, i32, i32, i32) {
    %c0_i32 = arith.constant 0 : i32
    %c0_i32_0 = arith.constant 0 : i32
    %c0_i32_1 = arith.constant 0 : i32
    %c0_i32_2 = arith.constant 0 : i32
    return %c0_i32, %c0_i32_0, %arg0, %c0_i32_1 : i32, i32, i32, i32
  }
  func.func @transform_3(%arg0: i32, %arg1: i32) -> (i32, i32, i32, i32) {
    %c0_i32 = arith.constant 0 : i32
    %c0_i32_0 = arith.constant 0 : i32
    %c0_i32_1 = arith.constant 0 : i32
    %c0_i32_2 = arith.constant 0 : i32
    return %c0_i32, %c0_i32_0, %arg0, %c0_i32_1 : i32, i32, i32, i32
  }
  func.func @transform_4(%arg0: i32, %arg1: i32) -> (i32, i32, i32, i32) {
    %c0_i32 = arith.constant 0 : i32
    %c0_i32_0 = arith.constant 0 : i32
    %c0_i32_1 = arith.constant 0 : i32
    return %arg1, %c0_i32, %arg0, %c0_i32_0 : i32, i32, i32, i32
  }
  func.func @transform_5(%arg0: i32, %arg1: i32) -> (i32, i32, i32, i32) {
    %c0_i32 = arith.constant 0 : i32
    %c0_i32_0 = arith.constant 0 : i32
    %c0_i32_1 = arith.constant 0 : i32
    return %arg1, %c0_i32, %arg0, %c0_i32_0 : i32, i32, i32, i32
  }
}

</mosaic_0001>

<bundles_post_ra>
// kernel: custom-call.2
= control target key start
LH: loop header
LB: loop body
LE: loop exit
PB: predicated region body
PF: predicated region fallthrough
CT: control target
= control target key end

     0   :  { %2 = vsyncpa [#allocation0], 0  ;;  %s61_s0 = inlined_call_operand.hbm [shape: c64[4,4,16,16], index: 0, kind: input, shape index: {}]   ;;  %s62_s1 = inlined_call_operand.vmem [shape: f32[4,4,16,16], index: 1, kind: output, shape index: {}]  }
   0x1   :  { %s3_s8 = sshll.u32 %s62_s1, 4  ;;  %s9_s11 = scalar_lea.hbm %s61_s0, 4096  ;;  %s4_s8 = int_to_ptr.vmem [resolvable:$true] %s3_s8 }
   0x2   :  { %p10_p0 = scmp.ne.s32.totalorder %s61_s0, %s9_s11  ;;  %s11_s16 = scalar_lea.hbm %s61_s0, 8192 }
   0x3   :  { %p12_p1 = scmp.lt.u32.totalorder %s11_s16, %s9_s11  ;;  %p13_p2 = scmp.lt.u32.totalorder %s9_s11, %s61_s0 }
   0x5   :  { %p14_p3 = por %p13_p2, %p12_p1 }
   0x7   :  { %p15_p4 = pnand %p14_p3, %p10_p0 }
   0x9   :  { %18 = shalt.err (!%p15_p4)  }
   0xa   :  { %s19_s1 = scalar_lea.vmem %s4_s8, 4096  ;;  %p24_p6 = scmp.lt.s32.totalorder %s4_s8, %s4_s8 }
   0xb   :  { %p20_p5 = scmp.ne.s32.totalorder %s4_s8, %s19_s1  ;;  %p25_p7 = scmp.lt.s32.totalorder %s19_s1, %s19_s1 }
   0xd   :  { %p26_p8 = por %p25_p7, %p24_p6 }
   0xf   :  { %p27_p9 = pnand %p26_p8, %p20_p5 }
  0x11   :  { %30 = shalt.err (!%p27_p9)  }
  0x12   :  { %6 = dma.hbm_to_vmem [thread:$0]  %s61_s0, 4096, %s4_s8, [#allocation0] }
  0x13   :  { %31 = dma.done.wait [#allocation0], 4096  }
  0x14   :  { %32 = vsyncadd [#allocation0], 4294963200 }
  0x15   :  { %8 = vsyncpa [#allocation0], 1 }

// kernel: custom-call.3
= control target key start
LH: loop header
LB: loop body
LE: loop exit
PB: predicated region body
PF: predicated region fallthrough
CT: control target
= control target key end

     0   :  { %s59_s0 = inlined_call_operand.hbm [shape: c64[4,4,16,16], index: 0, kind: input, shape index: {}]   ;;  %s60_s1 = inlined_call_operand.vmem [shape: f32[4,4,16,16], index: 1, kind: output, shape index: {}]  }
   0x1   :  { %s2_s8 = scalar_lea.hbm %s59_s0, 4096 }
   0x2   :  { %3 = vsyncpa [#allocation0], 0  ;;  %s4_s11 = sshll.u32 %s60_s1, 4  ;;  %s34_s14 = scalar_lea.hbm %s59_s0, 8192  ;;  %s5_s11 = int_to_ptr.vmem [resolvable:$true] %s4_s11 }
   0x3   :  { %p11_p0 = scmp.ne.s32.totalorder %s2_s8, %s34_s14  ;;  %p13_p1 = scmp.lt.u32.totalorder %s2_s8, %s59_s0 }
   0x4   :  { %p14_p2 = scmp.lt.u32.totalorder %s34_s14, %s34_s14  ;;  %p16_p4 = scmp.lt.u32.totalorder %s34_s14, %s2_s8 }
   0x6   :  { %p15_p3 = por %p14_p2, %p13_p1 }
   0x8   :  { %p17_p5 = por %p16_p4, %p15_p3 }
   0xa   :  { %p18_p6 = pnand %p17_p5, %p11_p0 }
   0xc   :  { %21 = shalt.err (!%p18_p6)  }
   0xd   :  { %s22_s17 = scalar_lea.vmem %s5_s11, 4096  ;;  %p27_p8 = scmp.lt.s32.totalorder %s5_s11, %s5_s11 }
   0xe   :  { %p23_p7 = scmp.ne.s32.totalorder %s5_s11, %s22_s17  ;;  %p28_p9 = scmp.lt.s32.totalorder %s22_s17, %s22_s17 }
  0x10   :  { %p29_p10 = por %p28_p9, %p27_p8 }
  0x12   :  { %p30_p11 = pnand %p29_p10, %p23_p7 }
  0x14   :  { %33 = shalt.err (!%p30_p11)  }
  0x15   :  { %7 = dma.hbm_to_vmem [thread:$0]  %s2_s8, 4096, %s5_s11, [#allocation0] }
  0x16   :  { %35 = dma.done.wait [#allocation0], 4096  }
  0x17   :  { %36 = vsyncadd [#allocation0], 4294963200 }
  0x18   :  { %9 = vsyncpa [#allocation0], 1 }

// kernel: custom-call
= control target key start
LH: loop header
LB: loop body
LE: loop exit
PB: predicated region body
PF: predicated region fallthrough
CT: control target
= control target key end

     0   :  { %2 = vsyncpa [#allocation0], 0  ;;  %s61_s0 = inlined_call_operand.hbm [shape: c64[2,4,16,16], index: 0, kind: input, shape index: {}]   ;;  %s62_s1 = inlined_call_operand.vmem [shape: f32[2,4,16,16], index: 1, kind: output, shape index: {}]  }
   0x1   :  { %s3_s8 = sshll.u32 %s62_s1, 4  ;;  %s9_s11 = scalar_lea.hbm %s61_s0, 2048  ;;  %s4_s8 = int_to_ptr.vmem [resolvable:$true] %s3_s8 }
   0x2   :  { %p10_p0 = scmp.ne.s32.totalorder %s61_s0, %s9_s11  ;;  %s11_s16 = scalar_lea.hbm %s61_s0, 4096 }
   0x3   :  { %p12_p1 = scmp.lt.u32.totalorder %s11_s16, %s9_s11  ;;  %p13_p2 = scmp.lt.u32.totalorder %s9_s11, %s61_s0 }
   0x5   :  { %p14_p3 = por %p13_p2, %p12_p1 }
   0x7   :  { %p15_p4 = pnand %p14_p3, %p10_p0 }
   0x9   :  { %18 = shalt.err (!%p15_p4)  }
   0xa   :  { %s19_s1 = scalar_lea.vmem %s4_s8, 2048  ;;  %p24_p6 = scmp.lt.s32.totalorder %s4_s8, %s4_s8 }
   0xb   :  { %p20_p5 = scmp.ne.s32.totalorder %s4_s8, %s19_s1  ;;  %p25_p7 = scmp.lt.s32.totalorder %s19_s1, %s19_s1 }
   0xd   :  { %p26_p8 = por %p25_p7, %p24_p6 }
   0xf   :  { %p27_p9 = pnand %p26_p8, %p20_p5 }
  0x11   :  { %30 = shalt.err (!%p27_p9)  }
  0x12   :  { %6 = dma.hbm_to_vmem [thread:$0]  %s61_s0, 2048, %s4_s8, [#allocation0] }
  0x13   :  { %31 = dma.done.wait [#allocation0], 2048  }
  0x14   :  { %32 = vsyncadd [#allocation0], 4294965248 }
  0x15   :  { %8 = vsyncpa [#allocation0], 1 }

// kernel: custom-call.1
= control target key start
LH: loop header
LB: loop body
LE: loop exit
PB: predicated region body
PF: predicated region fallthrough
CT: control target
= control target key end

     0   :  { %s59_s0 = inlined_call_operand.hbm [shape: c64[2,4,16,16], index: 0, kind: input, shape index: {}]   ;;  %s60_s1 = inlined_call_operand.vmem [shape: f32[2,4,16,16], index: 1, kind: output, shape index: {}]  }
   0x1   :  { %s2_s8 = scalar_lea.hbm %s59_s0, 2048 }
   0x2   :  { %3 = vsyncpa [#allocation0], 0  ;;  %s4_s11 = sshll.u32 %s60_s1, 4  ;;  %s34_s14 = scalar_lea.hbm %s59_s0, 4096  ;;  %s5_s11 = int_to_ptr.vmem [resolvable:$true] %s4_s11 }
   0x3   :  { %p11_p0 = scmp.ne.s32.totalorder %s2_s8, %s34_s14  ;;  %p13_p1 = scmp.lt.u32.totalorder %s2_s8, %s59_s0 }
   0x4   :  { %p14_p2 = scmp.lt.u32.totalorder %s34_s14, %s34_s14  ;;  %p16_p4 = scmp.lt.u32.totalorder %s34_s14, %s2_s8 }
   0x6   :  { %p15_p3 = por %p14_p2, %p13_p1 }
   0x8   :  { %p17_p5 = por %p16_p4, %p15_p3 }
   0xa   :  { %p18_p6 = pnand %p17_p5, %p11_p0 }
   0xc   :  { %21 = shalt.err (!%p18_p6)  }
   0xd   :  { %s22_s17 = scalar_lea.vmem %s5_s11, 2048  ;;  %p27_p8 = scmp.lt.s32.totalorder %s5_s11, %s5_s11 }
   0xe   :  { %p23_p7 = scmp.ne.s32.totalorder %s5_s11, %s22_s17  ;;  %p28_p9 = scmp.lt.s32.totalorder %s22_s17, %s22_s17 }
  0x10   :  { %p29_p10 = por %p28_p9, %p27_p8 }
  0x12   :  { %p30_p11 = pnand %p29_p10, %p23_p7 }
  0x14   :  { %33 = shalt.err (!%p30_p11)  }
  0x15   :  { %7 = dma.hbm_to_vmem [thread:$0]  %s2_s8, 2048, %s5_s11, [#allocation0] }
  0x16   :  { %35 = dma.done.wait [#allocation0], 2048  }
  0x17   :  { %36 = vsyncadd [#allocation0], 4294965248 }
  0x18   :  { %9 = vsyncpa [#allocation0], 1 }

// kernel: custom-call.4
= control target key start
LH: loop header
LB: loop body
LE: loop exit
PB: predicated region body
PF: predicated region fallthrough
CT: control target
= control target key end

     0   :  { %s126_s0 = inlined_call_operand.vmem [shape: f32[2,4,16,16], index: 0, kind: input, shape index: {}]   ;;  %s127_s1 = inlined_call_operand.vmem [shape: f32[2,4,16,16], index: 1, kind: input, shape index: {}]   ;;  %s128_s2 = inlined_call_operand.hbm [shape: c64[2,4,16,16], index: 2, kind: output, shape index: {}]  }
   0x1   :  { %s87_s11 = scalar_lea.hbm %s128_s2, 2048 }
   0x2   :  { %4 = vsyncpa [#allocation0], 0  ;;  %s5_s14 = sshll.u32 %s126_s0, 4  ;;  %s6_s14 = int_to_ptr.vmem [resolvable:$true] %s5_s14 }
   0x3   :  { %s18_s15 = scalar_lea.vmem %s6_s14, 2048  ;;  %p23_p1 = scmp.lt.s32.totalorder %s6_s14, %s6_s14 }
   0x4   :  { %p19_p0 = scmp.ne.s32.totalorder %s6_s14, %s18_s15  ;;  %p24_p2 = scmp.lt.s32.totalorder %s18_s15, %s18_s15 }
   0x6   :  { %p25_p3 = por %p24_p2, %p23_p1 }
   0x8   :  { %p26_p4 = pnand %p25_p3, %p19_p0 }
   0xa   :  { %29 = shalt.err (!%p26_p4)  }
   0xb   :  { %p31_p5 = scmp.ne.s32.totalorder %s128_s2, %s87_s11  ;;  %s32_s0 = scalar_lea.hbm %s128_s2, 4096 }
   0xc   :  { %p33_p6 = scmp.lt.u32.totalorder %s32_s0, %s87_s11  ;;  %p34_p7 = scmp.lt.u32.totalorder %s87_s11, %s128_s2 }
   0xe   :  { %p35_p8 = por %p34_p7, %p33_p6 }
  0x10   :  { %p36_p9 = pnand %p35_p8, %p31_p5 }
  0x12   :  { %39 = shalt.err (!%p36_p9)  }
  0x13   :  { %8 = dma.vmem_to_hbm [thread:$0]  %s6_s14, 2048, %s128_s2, [#allocation0] }
  0x14   :  { %65 = dma.done.wait [#allocation0], 2048  }
  0x15   :  { %66 = vsyncadd [#allocation0], 4294965248 }
  0x16   :  { %10 = vsyncpa [#allocation0], 1 }
  0x17   :  { %11 = vsyncpa [#allocation1], 0  ;;  %s12_s28 = sshll.u32 %s127_s1, 4  ;;  %s13_s28 = int_to_ptr.vmem [resolvable:$true] %s12_s28 }
  0x18   :  { %s40_s29 = scalar_lea.vmem %s13_s28, 2048  ;;  %p45_p11 = scmp.lt.s32.totalorder %s13_s28, %s13_s28 }
  0x19   :  { %p41_p10 = scmp.ne.s32.totalorder %s13_s28, %s40_s29  ;;  %p46_p12 = scmp.lt.s32.totalorder %s40_s29, %s40_s29 }
  0x1b   :  { %p47_p13 = por %p46_p12, %p45_p11 }
  0x1d   :  { %p48_p0 = pnand %p47_p13, %p41_p10 }
  0x1f   :  { %51 = shalt.err (!%p48_p0)  }
  0x20   :  { %p53_p1 = scmp.ne.s32.totalorder %s87_s11, %s32_s0  ;;  %p56_p2 = scmp.lt.u32.totalorder %s32_s0, %s32_s0 }
  0x22   :  { %p57_p3 = por %p56_p2, %p34_p7 }
  0x24   :  { %p59_p4 = por %p57_p3, %p33_p6 }
  0x26   :  { %p60_p5 = pnand %p59_p4, %p53_p1 }
  0x28   :  { %63 = shalt.err (!%p60_p5)  }
  0x29   :  { %15 = dma.vmem_to_hbm [thread:$0]  %s13_s28, 2048, %s87_s11, [#allocation1] }
  0x2a   :  { %67 = dma.done.wait [#allocation1], 2048  }
  0x2b   :  { %68 = vsyncadd [#allocation1], 4294965248 }
  0x2c   :  { %17 = vsyncpa [#allocation1], 1 }

// kernel: multichannel_weight_forward.1
= control target key start
LH: loop header
LB: loop body
LE: loop exit
PB: predicated region body
PF: predicated region fallthrough
CT: control target
= control target key end

     0   :  { %s1156_s0 = inlined_call_operand.vmem [shape: f32[2,4,8,128], index: 0, kind: input, shape index: {}]   ;;  %s1157_s1 = inlined_call_operand.vmem [shape: f32[2,4,8,128], index: 1, kind: input, shape index: {}]   ;;  %s1158_s2 = inlined_call_operand.vmem [shape: f32[4,4,8,128], index: 2, kind: input, shape index: {}]   ;;  %s1159_s3 = inlined_call_operand.vmem [shape: f32[4,4,8,128], index: 3, kind: input, shape index: {}]   ;;  %s1160_s4 = inlined_call_operand.vmem [shape: f32[2,4,8,128], index: 4, kind: output, shape index: {0}]   ;;  %s1161_s5 = inlined_call_operand.vmem [shape: f32[2,4,8,128], index: 5, kind: output, shape index: {1}]  }
   0x1   :  { %v615_v0 = vld [vmem:[%s1156_s0] sm:$0xff]  ;;  %v620_v1 = vld [vmem:[%s1156_s0 + $0x8] sm:$0xff]  ;;  %v630_v3 = vld [vmem:[%s1156_s0 + $0x10] sm:$0xff] }
   0x2   :  { %v625_v2 = vld [vmem:[%s1157_s1] sm:$0xff]  ;;  %v635_v4 = vld [vmem:[%s1156_s0 + $0x18] sm:$0xff]  ;;  %v640_v5 = vld [vmem:[%s1157_s1 + $0x8] sm:$0xff] }
   0x3   :  { %v645_v6 = vld [vmem:[%s1157_s1 + $0x10] sm:$0xff]  ;;  %v650_v7 = vld [vmem:[%s1158_s2] sm:$0xff]  ;;  %v697_v20 = vld [vmem:[%s1158_s2 + $0x8] sm:$0xff] }
   0x4   :  { %v655_v8 = vld [vmem:[%s1159_s3] sm:$0xff]  ;;  %v38_v9 = vmul.f32 %v650_v7, %v615_v0  ;;  %v41_v12 = vmul.f32 %v650_v7, %v625_v2  ;;  %v702_v21 = vld [vmem:[%s1159_s3 + $0x8] sm:$0xff]  ;;  %v707_v22 = vld [vmem:[%s1157_s1 + $0x18] sm:$0xff]  ;;  %v89_v36 = vmul.f32 %v697_v20, %v615_v0  ;;  %v92_v50 = vmul.f32 %v697_v20, %v625_v2 }
   0x5   :  { %v662_v10 = vld [vmem:[%s1158_s2 + $0x20] sm:$0xff]  ;;  %v39_v13 = vmul.f32 %v655_v8, %v625_v2  ;;  %v42_v18 = vmul.f32 %v655_v8, %v615_v0  ;;  %v721_v28 = vld [vmem:[%s1158_s2 + $0x28] sm:$0xff]  ;;  %v90_v37 = vmul.f32 %v702_v21, %v625_v2  ;;  %v93_v51 = vmul.f32 %v702_v21, %v615_v0  ;;  %v778_v57 = vld [vmem:[%s1158_s2 + $0x10] sm:$0xff] }
   0x6   :  { %v667_v11 = vld [vmem:[%s1159_s3 + $0x20] sm:$0xff]  ;;  %v49_v14 = vmul.f32 %v662_v10, %v620_v1  ;;  %v53_v19 = vmul.f32 %v662_v10, %v640_v5  ;;  %v734_v33 = vld [vmem:[%s1159_s3 + $0x28] sm:$0xff]  ;;  %v100_v41 = vmul.f32 %v721_v28, %v620_v1  ;;  %v104_v52 = vmul.f32 %v721_v28, %v640_v5  ;;  %v783_v58 = vld [vmem:[%s1159_s3 + $0x10] sm:$0xff] }
   0x7   :  { %v678_v15 = vld [vmem:[%s1158_s2 + $0x40] sm:$0xff]  ;;  %v40_v23 = vadd.f32 %v39_v13, %v38_v9  ;;  %v51_v24 = vmul.f32 %v667_v11, %v640_v5  ;;  %v43_v26 = vsub.f32 %v41_v12, %v42_v18  ;;  %v55_v27 = vmul.f32 %v667_v11, %v620_v1  ;;  %v751_v42 = vld [vmem:[%s1158_s2 + $0x48] sm:$0xff]  ;;  %v788_v59 = vld [vmem:[%s1158_s2 + $0x30] sm:$0xff] }
   0x8   :  { %v683_v16 = vld [vmem:[%s1159_s3 + $0x40] sm:$0xff]  ;;  %v62_v29 = vmul.f32 %v678_v15, %v630_v3  ;;  %v66_v32 = vmul.f32 %v678_v15, %v645_v6  ;;  %v91_v45 = vadd.f32 %v90_v37, %v89_v36  ;;  %v102_v46 = vmul.f32 %v734_v33, %v640_v5  ;;  %v758_v47 = vld [vmem:[%s1159_s3 + $0x48] sm:$0xff] }
   0x9   :  { %v688_v17 = vld [vmem:[%s1158_s2 + $0x60] sm:$0xff]  ;;  %v64_v30 = vmul.f32 %v683_v16, %v645_v6  ;;  %v50_v34 = vadd.f32 %v49_v14, %v40_v23  ;;  %v54_v35 = vadd.f32 %v53_v19, %v43_v26  ;;  %v68_v39 = vmul.f32 %v683_v16, %v630_v3  ;;  %v763_v48 = vld [vmem:[%s1158_s2 + $0x68] sm:$0xff]  ;;  %v806_v19 = vld [vmem:[%s1159_s3 + $0x30] sm:$0xff] }
   0xa   :  { %v714_v25 = vld [vmem:[%s1159_s3 + $0x60] sm:$0xff]  ;;  %v75_v31 = vmul.f32 %v688_v17, %v635_v4  ;;  %v79_v40 = vmul.f32 %v688_v17, %v707_v22  ;;  %v101_v55 = vadd.f32 %v100_v41, %v91_v45  ;;  %v113_v56 = vmul.f32 %v751_v42, %v630_v3  ;;  %v795_v61 = vld [vmem:[%s1159_s3 + $0x68] sm:$0xff]  ;;  %v830_v45 = vld [vmem:[%s1159_s3 + $0x50] sm:$0xff] }
   0xb   :  { %v77_v38 = vmul.f32 %v714_v25, %v707_v22  ;;  %v52_v43 = vadd.f32 %v51_v24, %v50_v34  ;;  %v56_v44 = vsub.f32 %v54_v35, %v55_v27  ;;  %v81_v49 = vmul.f32 %v714_v25, %v635_v4  ;;  %v819_v35 = vld [vmem:[%s1158_s2 + $0x50] sm:$0xff] }
   0xc   :  { %v115_v60 = vmul.f32 %v758_v47, %v645_v6  ;;  %v126_v62 = vmul.f32 %v763_v48, %v635_v4  ;;  %v94_v63 = vsub.f32 %v92_v50, %v93_v51  ;;  %v106_v9 = vmul.f32 %v734_v33, %v620_v1 }
   0xd   :  { %v63_v53 = vadd.f32 %v62_v29, %v52_v43  ;;  %v67_v54 = vadd.f32 %v66_v32, %v56_v44  ;;  %v103_v14 = vadd.f32 %v102_v46, %v101_v55  ;;  %v117_v18 = vmul.f32 %v751_v42, %v645_v6  ;;  %v835_v46 = vld [vmem:[%s1158_s2 + $0x70] sm:$0xff] }
   0xe   :  { %v105_v23 = vadd.f32 %v104_v52, %v94_v63  ;;  %v142_v24 = vmul.f32 %v778_v57, %v615_v0  ;;  %v143_v26 = vmul.f32 %v783_v58, %v625_v2  ;;  %v153_v27 = vmul.f32 %v788_v59, %v620_v1  ;;  %v866_v63 = vld [vmem:[%s1159_s3 + $0x18] sm:$0xff] }
   0xf   :  { %v65_v12 = vadd.f32 %v64_v30, %v63_v53  ;;  %v69_v13 = vsub.f32 %v67_v54, %v68_v39  ;;  %v114_v32 = vadd.f32 %v113_v56, %v103_v14  ;;  %v128_v34 = vmul.f32 %v795_v61, %v707_v22  ;;  %v875_v14 = vld [vmem:[%s1158_s2 + $0x38] sm:$0xff] }
  0x10   :  { %v107_v36 = vsub.f32 %v105_v23, %v106_v9  ;;  %v119_v37 = vmul.f32 %v758_v47, %v630_v3  ;;  %v144_v39 = vadd.f32 %v143_v26, %v142_v24  ;;  %v155_v41 = vmul.f32 %v806_v19, %v640_v5 }
  0x11   :  { %v76_v29 = vadd.f32 %v75_v31, %v65_v12  ;;  %v80_v30 = vadd.f32 %v79_v40, %v69_v13  ;;  %v116_v40 = vadd.f32 %v115_v60, %v114_v32  ;;  %v130_v44 = vmul.f32 %v763_v48, %v707_v22  ;;  %v861_v60 = vld [vmem:[%s1158_s2 + $0x18] sm:$0xff] }
  0x12   :  { %v118_v50 = vadd.f32 %v117_v18, %v107_v36  ;;  %v154_v51 = vadd.f32 %v153_v27, %v144_v39  ;;  %v145_v52 = vmul.f32 %v778_v57, %v625_v2  ;;  %v132_v54 = vmul.f32 %v795_v61, %v635_v4  ;;  %v884_v27 = vld [vmem:[%s1159_s3 + $0x38] sm:$0xff] }
  0x13   :  { %v78_v43 = vadd.f32 %v77_v38, %v76_v29  ;;  %v82_v31 = vsub.f32 %v80_v30, %v81_v49  ;;  %v166_v38 = vmul.f32 %v819_v35, %v630_v3  ;;  %v842_v49 = vld [vmem:[%s1159_s3 + $0x70] sm:$0xff]  ;;  %v127_v53 = vadd.f32 %v126_v62, %v116_v40  ;;  %v893_v36 = vld [vmem:[%s1158_s2 + $0x58] sm:$0xff] }
  0x14   :  { %v146_v55 = vmul.f32 %v783_v58, %v615_v0  ;;  %v157_v56 = vmul.f32 %v788_v59, %v640_v5  ;;  %v120_v62 = vsub.f32 %v118_v50, %v119_v37  ;;  %v156_v9 = vadd.f32 %v155_v41, %v154_v51  ;;  %v909_v51 = vld [vmem:[%s1159_s3 + $0x58] sm:$0xff] }
  0x15   :  { %83 = vst [vmem:[%s1160_s4] sm:$0xff] %v78_v43  ;;  %84 = vst [vmem:[%s1161_s5] sm:$0xff] %v82_v31  ;;  %v168_v12 = vmul.f32 %v830_v45, %v645_v6  ;;  %v179_v13 = vmul.f32 %v835_v46, %v635_v4  ;;  %v129_v18 = vadd.f32 %v128_v34, %v127_v53 }
  0x16   :  { %v181_v23 = vmul.f32 %v842_v49, %v707_v22  ;;  %v147_v24 = vsub.f32 %v145_v52, %v146_v55  ;;  %v159_v26 = vmul.f32 %v806_v19, %v620_v1  ;;  %v131_v29 = vadd.f32 %v130_v44, %v120_v62 }
  0x17   :  { %v167_v30 = vadd.f32 %v166_v38, %v156_v9  ;;  %v195_v32 = vmul.f32 %v861_v60, %v615_v0  ;;  %v196_v34 = vmul.f32 %v866_v63, %v625_v2  ;;  %514 = vst [vmem:[%s1160_s4 + $0x8] sm:$0xff] %v129_v18  ;;  %v170_v39 = vmul.f32 %v819_v35, %v645_v6  ;;  %v914_v38 = vld [vmem:[%s1158_s2 + $0x78] sm:$0xff] }
  0x18   :  { %v158_v37 = vadd.f32 %v157_v56, %v147_v24  ;;  %v172_v41 = vmul.f32 %v830_v45, %v630_v3  ;;  %v206_v43 = vmul.f32 %v875_v14, %v620_v1  ;;  %v133_v31 = vsub.f32 %v131_v29, %v132_v54  ;;  %v928_v9 = vld [vmem:[%s1159_s3 + $0x78] sm:$0xff]  ;;  %v953_v29 = vld [vmem:[%s1156_s0 + $0x28] sm:$0xff] }
  0x19   :  { %v169_v40 = vadd.f32 %v168_v12, %v167_v30  ;;  %v197_v44 = vadd.f32 %v196_v34, %v195_v32  ;;  %v208_v50 = vmul.f32 %v884_v27, %v640_v5  ;;  %v183_v53 = vmul.f32 %v835_v46, %v707_v22 }
  0x1a   :  { %v160_v52 = vsub.f32 %v158_v37, %v159_v26  ;;  %v219_v54 = vmul.f32 %v893_v36, %v630_v3  ;;  %v198_v55 = vmul.f32 %v861_v60, %v625_v2  ;;  %515 = vst [vmem:[%s1161_s5 + $0x8] sm:$0xff] %v133_v31  ;;  %v199_v12 = vmul.f32 %v866_v63, %v615_v0  ;;  %v937_v2 = vld [vmem:[%s1156_s0 + $0x20] sm:$0xff]  ;;  %v962_v31 = vld [vmem:[%s1156_s0 + $0x30] sm:$0xff] }
  0x1b   :  { %v180_v56 = vadd.f32 %v179_v13, %v169_v40  ;;  %v207_v62 = vadd.f32 %v206_v43, %v197_v44  ;;  %v210_v18 = vmul.f32 %v875_v14, %v640_v5  ;;  %v942_v13 = vld [vmem:[%s1157_s1 + $0x20] sm:$0xff]  ;;  %v185_v26 = vmul.f32 %v842_v49, %v635_v4 }
  0x1c   :  { %v171_v24 = vadd.f32 %v170_v39, %v160_v52  ;;  %v221_v0 = vmul.f32 %v909_v51, %v645_v6  ;;  %v232_v5 = vmul.f32 %v914_v38, %v635_v4  ;;  %v200_v34 = vsub.f32 %v198_v55, %v199_v12 }
  0x1d   :  { %v182_v30 = vadd.f32 %v181_v23, %v180_v56  ;;  %v209_v32 = vadd.f32 %v208_v50, %v207_v62  ;;  %v212_v37 = vmul.f32 %v884_v27, %v620_v1  ;;  %v234_v43 = vmul.f32 %v928_v9, %v707_v22  ;;  %v976_v50 = vld [vmem:[%s1157_s1 + $0x28] sm:$0xff] }
  0x1e   :  { %v173_v39 = vsub.f32 %v171_v24, %v172_v41  ;;  %v262_v40 = vmul.f32 %v937_v2, %v650_v7  ;;  %v263_v23 = vmul.f32 %v942_v13, %v655_v8  ;;  %v211_v41 = vadd.f32 %v210_v18, %v200_v34 }
  0x1f   :  { %524 = vst [vmem:[%s1160_s4 + $0x10] sm:$0xff] %v182_v30  ;;  %v220_v1 = vadd.f32 %v219_v54, %v209_v32  ;;  %v223_v44 = vmul.f32 %v893_v36, %v645_v6  ;;  %v270_v52 = vmul.f32 %v953_v29, %v662_v10  ;;  %v225_v56 = vmul.f32 %v909_v51, %v630_v3  ;;  %v996_v3 = vld [vmem:[%s1157_s1 + $0x30] sm:$0xff] }
  0x20   :  { %v184_v55 = vadd.f32 %v183_v53, %v173_v39  ;;  %v264_v62 = vadd.f32 %v263_v23, %v262_v40  ;;  %v272_v54 = vmul.f32 %v976_v50, %v667_v11  ;;  %v213_v18 = vsub.f32 %v211_v41, %v212_v37  ;;  %v991_v53 = vld [vmem:[%s1156_s0 + $0x38] sm:$0xff] }
  0x21   :  { %v222_v12 = vadd.f32 %v221_v0, %v220_v1  ;;  %v236_v6 = vmul.f32 %v914_v38, %v707_v22  ;;  %v280_v24 = vmul.f32 %v962_v31, %v678_v15  ;;  %v265_v0 = vmul.f32 %v942_v13, %v650_v7  ;;  %v1020_v41 = vld [vmem:[%s1157_s1 + $0x38] sm:$0xff] }
  0x22   :  { %v186_v30 = vsub.f32 %v184_v55, %v185_v26  ;;  %v271_v32 = vadd.f32 %v270_v52, %v264_v62  ;;  %v266_v22 = vmul.f32 %v937_v2, %v655_v8  ;;  %v224_v37 = vadd.f32 %v223_v44, %v213_v18 }
  0x23   :  { %v233_v34 = vadd.f32 %v232_v5, %v222_v12  ;;  %v238_v26 = vmul.f32 %v928_v9, %v635_v4  ;;  %v274_v39 = vmul.f32 %v976_v50, %v662_v10  ;;  %v282_v23 = vmul.f32 %v996_v3, %v683_v16 }
  0x24   :  { %525 = vst [vmem:[%s1161_s5 + $0x10] sm:$0xff] %v186_v30  ;;  %v273_v40 = vadd.f32 %v272_v54, %v271_v32  ;;  %v267_v7 = vsub.f32 %v265_v0, %v266_v22  ;;  %v276_v8 = vmul.f32 %v953_v29, %v667_v11  ;;  %v226_v1 = vsub.f32 %v224_v37, %v225_v56 }
  0x25   :  { %v235_v5 = vadd.f32 %v234_v43, %v233_v34  ;;  %v290_v4 = vmul.f32 %v991_v53, %v688_v17  ;;  %v284_v10 = vmul.f32 %v996_v3, %v678_v15  ;;  %v304_v55 = vmul.f32 %v937_v2, %v697_v20 }
  0x26   :  { %v281_v44 = vadd.f32 %v280_v24, %v273_v40  ;;  %v275_v52 = vadd.f32 %v274_v39, %v267_v7  ;;  %v305_v11 = vmul.f32 %v942_v13, %v702_v21  ;;  %v237_v43 = vadd.f32 %v236_v6, %v226_v1 }
  0x27   :  { %534 = vst [vmem:[%s1160_s4 + $0x18] sm:$0xff] %v235_v5  ;;  %v292_v15 = vmul.f32 %v1020_v41, %v714_v25  ;;  %v286_v56 = vmul.f32 %v962_v31, %v683_v16  ;;  %v312_v62 = vmul.f32 %v953_v29, %v721_v28  ;;  %v314_v24 = vmul.f32 %v976_v50, %v734_v33 }
  0x28   :  { %v283_v54 = vadd.f32 %v282_v23, %v281_v44  ;;  %v277_v12 = vsub.f32 %v275_v52, %v276_v8  ;;  %v306_v18 = vadd.f32 %v305_v11, %v304_v55  ;;  %v239_v30 = vsub.f32 %v237_v43, %v238_v26 }
  0x29   :  { %v294_v32 = vmul.f32 %v1020_v41, %v688_v17  ;;  %v322_v6 = vmul.f32 %v962_v31, %v751_v42  ;;  %v307_v0 = vmul.f32 %v942_v13, %v697_v20  ;;  %v308_v37 = vmul.f32 %v937_v2, %v702_v21 }
  0x2a   :  { %v291_v16 = vadd.f32 %v290_v4, %v283_v54  ;;  %v285_v22 = vadd.f32 %v284_v10, %v277_v12  ;;  %v313_v34 = vadd.f32 %v312_v62, %v306_v18  ;;  %535 = vst [vmem:[%s1161_s5 + $0x18] sm:$0xff] %v239_v30  ;;  %v296_v26 = vmul.f32 %v991_v53, %v714_v25 }
  0x2b   :  { %v324_v17 = vmul.f32 %v996_v3, %v758_v47  ;;  %v316_v39 = vmul.f32 %v976_v50, %v721_v28  ;;  %v318_v20 = vmul.f32 %v953_v29, %v734_v33  ;;  %v309_v21 = vsub.f32 %v307_v0, %v308_v37 }
  0x2c   :  { %v293_v40 = vadd.f32 %v292_v15, %v291_v16  ;;  %v287_v23 = vsub.f32 %v285_v22, %v286_v56  ;;  %v315_v7 = vadd.f32 %v314_v24, %v313_v34  ;;  %v332_v8 = vmul.f32 %v991_v53, %v763_v48 }
  0x2d   :  { %v326_v5 = vmul.f32 %v996_v3, %v751_v42  ;;  %v346_v25 = vmul.f32 %v937_v2, %v778_v57  ;;  %v347_v1 = vmul.f32 %v942_v13, %v783_v58  ;;  %v317_v4 = vadd.f32 %v316_v39, %v309_v21 }
  0x2e   :  { %550 = vst [vmem:[%s1160_s4 + $0x20] sm:$0xff] %v293_v40  ;;  %v295_v28 = vadd.f32 %v294_v32, %v287_v23  ;;  %v323_v33 = vadd.f32 %v322_v6, %v315_v7  ;;  %v354_v10 = vmul.f32 %v953_v29, %v788_v59  ;;  %v334_v44 = vmul.f32 %v1020_v41, %v795_v61 }
  0x2f   :  { %v328_v42 = vmul.f32 %v962_v31, %v758_v47  ;;  %v348_v52 = vadd.f32 %v347_v1, %v346_v25  ;;  %v356_v55 = vmul.f32 %v976_v50, %v806_v19  ;;  %v319_v15 = vsub.f32 %v317_v4, %v318_v20 }
  0x30   :  { %v297_v11 = vsub.f32 %v295_v28, %v296_v26  ;;  %v325_v43 = vadd.f32 %v324_v17, %v323_v33  ;;  %v336_v56 = vmul.f32 %v1020_v41, %v763_v48  ;;  %v364_v54 = vmul.f32 %v962_v31, %v819_v35 }
  0x31   :  { %v355_v62 = vadd.f32 %v354_v10, %v348_v52  ;;  %v349_v12 = vmul.f32 %v942_v13, %v778_v57  ;;  %v350_v47 = vmul.f32 %v937_v2, %v783_v58  ;;  %v327_v24 = vadd.f32 %v326_v5, %v319_v15 }
  0x32   :  { %551 = vst [vmem:[%s1161_s5 + $0x20] sm:$0xff] %v297_v11  ;;  %v333_v18 = vadd.f32 %v332_v8, %v325_v43  ;;  %v338_v30 = vmul.f32 %v991_v53, %v795_v61  ;;  %v358_v48 = vmul.f32 %v976_v50, %v788_v59  ;;  %v366_v6 = vmul.f32 %v996_v3, %v830_v45 }
  0x33   :  { %v357_v32 = vadd.f32 %v356_v55, %v355_v62  ;;  %v351_v57 = vsub.f32 %v349_v12, %v350_v47  ;;  %v360_v58 = vmul.f32 %v953_v29, %v806_v19  ;;  %v329_v16 = vsub.f32 %v327_v24, %v328_v42 }
  0x34   :  { %v335_v0 = vadd.f32 %v334_v44, %v333_v18  ;;  %v374_v22 = vmul.f32 %v991_v53, %v835_v46  ;;  %v368_v34 = vmul.f32 %v996_v3, %v819_v35  ;;  %v388_v59 = vmul.f32 %v937_v2, %v861_v60 }
  0x35   :  { %v365_v61 = vadd.f32 %v364_v54, %v357_v32  ;;  %v359_v37 = vadd.f32 %v358_v48, %v351_v57  ;;  %v389_v26 = vmul.f32 %v942_v13, %v866_v63  ;;  %v337_v19 = vadd.f32 %v336_v56, %v329_v16 }
  0x36   :  { %560 = vst [vmem:[%s1160_s4 + $0x28] sm:$0xff] %v335_v0  ;;  %v376_v17 = vmul.f32 %v1020_v41, %v842_v49  ;;  %v370_v39 = vmul.f32 %v962_v31, %v830_v45  ;;  %v396_v35 = vmul.f32 %v953_v29, %v875_v14  ;;  %v398_v7 = vmul.f32 %v976_v50, %v884_v27 }
  0x37   :  { %v367_v20 = vadd.f32 %v366_v6, %v365_v61  ;;  %v361_v40 = vsub.f32 %v359_v37, %v360_v58  ;;  %v390_v23 = vadd.f32 %v389_v26, %v388_v59  ;;  %v339_v21 = vsub.f32 %v337_v19, %v338_v30 }
  0x38   :  { %v378_v8 = vmul.f32 %v1020_v41, %v835_v46  ;;  %v406_v5 = vmul.f32 %v962_v31, %v893_v36  ;;  %v391_v25 = vmul.f32 %v942_v13, %v861_v60  ;;  %v392_v33 = vmul.f32 %v937_v2, %v866_v63 }
  0x39   :  { %v375_v45 = vadd.f32 %v374_v22, %v367_v20  ;;  %v369_v1 = vadd.f32 %v368_v34, %v361_v40  ;;  %v397_v28 = vadd.f32 %v396_v35, %v390_v23  ;;  %561 = vst [vmem:[%s1161_s5 + $0x28] sm:$0xff] %v339_v21  ;;  %v380_v4 = vmul.f32 %v991_v53, %v842_v49 }
  0x3a   :  { %v408_v46 = vmul.f32 %v996_v3, %v909_v51  ;;  %v400_v10 = vmul.f32 %v976_v50, %v875_v14  ;;  %v402_v60 = vmul.f32 %v953_v29, %v884_v27  ;;  %v393_v63 = vsub.f32 %v391_v25, %v392_v33 }
  0x3b   :  { %v377_v13 = vadd.f32 %v376_v17, %v375_v45  ;;  %v371_v44 = vsub.f32 %v369_v1, %v370_v39  ;;  %v399_v42 = vadd.f32 %v398_v7, %v397_v28  ;;  %v416_v2 = vmul.f32 %v991_v53, %v914_v38 }
  0x3c   :  { %v401_v55 = vadd.f32 %v400_v10, %v393_v63  ;;  %v410_v14 = vmul.f32 %v996_v3, %v893_v36  ;;  %v418_v27 = vmul.f32 %v1020_v41, %v928_v9  ;;  %v412_v43 = vmul.f32 %v962_v31, %v909_v51 }
  0x3d   :  { %570 = vst [vmem:[%s1160_s4 + $0x30] sm:$0xff] %v377_v13  ;;  %v379_v49 = vadd.f32 %v378_v8, %v371_v44  ;;  %v407_v52 = vadd.f32 %v406_v5, %v399_v42  ;;  %v420_v62 = vmul.f32 %v1020_v41, %v914_v38  ;;  %v422_v3 = vmul.f32 %v991_v53, %v928_v9 }
  0x3e   :  { %v403_v11 = vsub.f32 %v401_v55, %v402_v60 }
  0x3f   :  { %v381_v29 = vsub.f32 %v379_v49, %v380_v4  ;;  %v409_v50 = vadd.f32 %v408_v46, %v407_v52 }
  0x40   :  { %v411_v56 = vadd.f32 %v410_v14, %v403_v11 }
  0x41   :  { %571 = vst [vmem:[%s1161_s5 + $0x30] sm:$0xff] %v381_v29  ;;  %v417_v15 = vadd.f32 %v416_v2, %v409_v50 }
  0x42   :  { %v413_v36 = vsub.f32 %v411_v56, %v412_v43 }
  0x43   :  { %v419_v54 = vadd.f32 %v418_v27, %v417_v15 }
  0x44   :  { %v421_v12 = vadd.f32 %v420_v62, %v413_v36 }
  0x45   :  { %580 = vst [vmem:[%s1160_s4 + $0x38] sm:$0xff] %v419_v54 }
  0x46   :  { %v423_v51 = vsub.f32 %v421_v12, %v422_v3 }
  0x48   :  { %581 = vst [vmem:[%s1161_s5 + $0x38] sm:$0xff] %v423_v51 }

</bundles_post_ra>
